<compile_context>
chip_gen: v5e
topology: v5e:2x2
jax: 0.10.0
libtpu: 0.0.40
codegen_flags: <defaults>
</compile_context>

<pallas_src>
import functools

import jax
import jax.numpy as jnp
from jax import lax
from jax.experimental import pallas as pl
from jax.experimental.pallas import tpu as pltpu


# packed gate order: PyTorch stores (i, f, g, o); we pack (i, f, o, g) so the three
# sigmoid-activated gates are contiguous and g (tanh) is last.
GATE_ORDER = (0, 1, 3, 2)


# ----------------------------- Fused whole-model kernel -----------------------------

def _interffe_kernel(ids_ref, we_ref, wih_ref, whh_ref, b_ref,
                     w1_ref, b1_ref, w2_ref, b2_ref, w3_ref, b3_ref,
                     out_ref, *, T, B, H):
    N = T * B
    V = we_ref.shape[0]
    H2 = 2 * H
    H8 = 8 * H

    # ---- embedding lookup as a one-hot MXU matmul (N, V) @ (V, E) ----
    ids = ids_ref[...]                                           # (N, 1) int32
    vocab_iota = lax.broadcasted_iota(jnp.int32, (N, V), 1)
    onehot = (ids == vocab_iota).astype(jnp.float32)             # (N, V)
    emb = jnp.dot(onehot, we_ref[...],
                  preferred_element_type=jnp.float32)            # (N, E)

    # ---- hoisted input projection for every timestep / both directions (+ bias) ----
    xproj = (jnp.dot(emb, wih_ref[...], preferred_element_type=jnp.float32)
             + b_ref[...])                                       # (N, 8H), gate-major cols

    # hoisted constants for the recurrence
    whh = whh_ref[...]                                           # (2H, 8H) block-diagonal
    col8 = lax.broadcasted_iota(jnp.int32, (B, H8), 1)
    fwd_lane8 = (col8 % H2) < H                                  # fwd-direction lanes of the 8H gate vec
    col2 = lax.broadcasted_iota(jnp.int32, (B, H2), 1)
    fwd_lane2 = col2 < H                                         # fwd half of the (B, 2H) state

    h = jnp.zeros((B, H2), jnp.float32)                          # [h_fwd | h_bwd]
    c = jnp.zeros((B, H2), jnp.float32)
    h_steps = []                                                 # register-resident hidden sequence

    # ---- fused bidirectional recurrence, fully unrolled at trace time (T small, static) ----
    for s in range(T):
        rf = s * B                      # forward direction consumes x[s]
        rb = (T - 1 - s) * B            # backward direction consumes x[T-1-s]
        # lane-select instead of materializing x_fwd / x_bwd (bias already folded into xproj)
        xg = jnp.where(fwd_lane8, xproj[rf:rf + B, :], xproj[rb:rb + B, :])   # (B, 8H)
        z = xg + jnp.dot(h, whh, preferred_element_type=jnp.float32)          # (B, 8H)
        # gate-major layout: [ i_f|i_b , f_f|f_b , o_f|o_b , g_f|g_b ]
        sig = jax.nn.sigmoid(z)                                  # one full-width EUP pass (i, f, o lanes)
        i_g = sig[:, 0 * H2:1 * H2]
        f_g = sig[:, 1 * H2:2 * H2]
        o_g = sig[:, 2 * H2:3 * H2]
        g_g = jnp.tanh(z[:, 3 * H2:4 * H2])                      # one tanh EUP pass
        c = f_g * c + i_g * g_g
        h = o_g * jnp.tanh(c)
        h_steps.append(h)               # fwd half is time s, bwd half is time T-1-s

    # ---- assemble the packed (N, 2H) hidden sequence off the serial path ----
    # row block for time t = [ h_fwd(t) | h_bwd(t) ] = select(fwd lanes, h_steps[t], h_steps[T-1-t])
    rows = [jnp.where(fwd_lane2, h_steps[t], h_steps[T - 1 - t]) for t in range(T)]
    hidden = jnp.concatenate(rows, axis=0)                       # (N, 2H)

    # ---- MLP head on the packed (T*B, 2H) activations (single w1 matmul) ----
    h1 = jnp.maximum(
        jnp.dot(hidden, w1_ref[...], preferred_element_type=jnp.float32) + b1_ref[...],
        0.0,
    )                                                            # (N, 128)
    h2 = jnp.maximum(
        jnp.dot(h1, w2_ref[...], preferred_element_type=jnp.float32) + b2_ref[...],
        0.0,
    )                                                            # (N, 30)
    # lane-dense final store: w3/b3 are zero-padded to 128 output columns
    out_ref[...] = (
        jnp.dot(h2, w3_ref[...], preferred_element_type=jnp.float32) + b3_ref[...]
    )                                                            # (N, 128)


def interffe_lstm_forward(token_ids, fp, n_out: int = 2):
    """token_ids: (T, B) int32 (time-major, equal-length packed). fp: fused params."""
    T, B = token_ids.shape
    H = fp["w_hh"].shape[0] // 2
    N = T * B
    ids = token_ids.reshape(N, 1).astype(jnp.int32)

    args = (ids, fp["we"], fp["w_ih"], fp["w_hh"], fp["b"],
            fp["w1"], fp["b1"], fp["w2"], fp["b2"], fp["w3"], fp["b3"])

    def full(a):
        return pl.BlockSpec(a.shape, lambda: (0,) * a.ndim)

    kernel = functools.partial(_interffe_kernel, T=T, B=B, H=H)
    n_out_pad = fp["w3"].shape[1]                                # lane-padded (128)
    out = pl.pallas_call(
        kernel,
        out_shape=jax.ShapeDtypeStruct((N, n_out_pad), jnp.float32),
        grid=(),
        in_specs=[full(a) for a in args],
        out_specs=pl.BlockSpec((N, n_out_pad), lambda: (0, 0)),
    )(*args)
    return out[:, :n_out]


# ----------------------------- Parameter packing -----------------------------

def pack_params(p):
    """Build fused gate-major / block-diagonal LSTM weights and lane-padded MLP weights."""
    H = p["w_hh_f"].shape[0]

    def gate_major(mf, mb):
        # (..., 4H) x2  ->  (..., 8H) with columns [i_f,i_b,f_f,f_b,o_f,o_b,g_f,g_b]
        blocks = []
        for g in GATE_ORDER:
            blocks.append(mf[..., g * H:(g + 1) * H])
            blocks.append(mb[..., g * H:(g + 1) * H])
        return jnp.concatenate(blocks, axis=-1)

    w_ih = gate_major(p["w_ih_f"], p["w_ih_b"])                  # (E, 8H)
    b = gate_major(p["b_f"], p["b_b"])                           # (1, 8H)

    # block-diagonal recurrent weight: rows 0:H = h_fwd, rows H:2H = h_bwd
    w_hh = jnp.zeros((2 * H, 8 * H), jnp.float32)
    for pos, g in enumerate(GATE_ORDER):
        w_hh = w_hh.at[0:H, pos * 2 * H:pos * 2 * H + H].set(
            p["w_hh_f"][:, g * H:(g + 1) * H])
        w_hh = w_hh.at[H:2 * H, pos * 2 * H + H:(pos + 1) * 2 * H].set(
            p["w_hh_b"][:, g * H:(g + 1) * H])

    # pad the first MLP hidden dim 100 -> 128 (lane friendly); zero padding keeps semantics
    d1 = p["w1"].shape[1]
    d1p = max(128, ((d1 + 127) // 128) * 128)
    w1 = jnp.zeros((p["w1"].shape[0], d1p), jnp.float32).at[:, :d1].set(p["w1"])
    b1 = jnp.zeros((1, d1p), jnp.float32).at[:, :d1].set(p["b1"])
    w2 = jnp.zeros((d1p, p["w2"].shape[1]), jnp.float32).at[:d1, :].set(p["w2"])

    # lane-dense output: pad the final layer's 2 columns -> 128 (wrapper slices [:, :2])
    n_out = p["w3"].shape[1]
    w3 = jnp.zeros((p["w3"].shape[0], 128), jnp.float32).at[:, :n_out].set(p["w3"])
    b3 = jnp.zeros((1, 128), jnp.float32).at[:, :n_out].set(p["b3"])

    return {"we": p["we"], "w_ih": w_ih, "w_hh": w_hh, "b": b,
            "w1": w1, "b1": b1, "w2": w2, "b2": p["b2"],
            "w3": w3, "b3": b3}


# ----------------------------- Parameter init -----------------------------

def init_params(key, vocab=20, emb_dim=32):
    H = int(emb_dim * 0.5)
    ks = jax.random.split(key, 16)
    s = 0.1

    def rnd(k, shape):
        return jax.random.normal(k, shape, dtype=jnp.float32) * s

    return {
        "we":     rnd(ks[0], (vocab, emb_dim)),
        # forward-direction LSTM (weights stored as (in, 4H), PyTorch gate order i,f,g,o)
        "w_ih_f": rnd(ks[1], (emb_dim, 4 * H)),
        "w_hh_f": rnd(ks[2], (H, 4 * H)),
        "b_f":    rnd(ks[3], (1, 4 * H)),        # b_ih + b_hh combined
        # backward-direction LSTM
        "w_ih_b": rnd(ks[4], (emb_dim, 4 * H)),
        "w_hh_b": rnd(ks[5], (H, 4 * H)),
        "b_b":    rnd(ks[6], (1, 4 * H)),
        # MLP head
        "w1": rnd(ks[7], (2 * H, 100)), "b1": rnd(ks[8],  (1, 100)),
        "w2": rnd(ks[9], (100, 30)),    "b2": rnd(ks[10], (1, 30)),
        "w3": rnd(ks[11], (30, 2)),     "b3": rnd(ks[12], (1, 2)),
    }


# ----------------------------- Pure-JAX reference (correctness check) -----------------------------

def _reference_forward(token_ids, p):
    hi = lax.Precision.HIGHEST
    emb = jnp.take(p["we"], token_ids, axis=0)                   # (T, B, E)
    T, B, _ = emb.shape
    H = p["w_hh_f"].shape[0]

    def run(w_ih, w_hh, b, reverse):
        h = jnp.zeros((B, H), jnp.float32)
        c = jnp.zeros((B, H), jnp.float32)
        outs = [None] * T
        order = range(T - 1, -1, -1) if reverse else range(T)
        for t in order:
            z = jnp.dot(emb[t], w_ih, precision=hi) + jnp.dot(h, w_hh, precision=hi) + b
            i = jax.nn.sigmoid(z[:, 0 * H:1 * H])
            f = jax.nn.sigmoid(z[:, 1 * H:2 * H])
            g = jnp.tanh(z[:, 2 * H:3 * H])
            o = jax.nn.sigmoid(z[:, 3 * H:4 * H])
            c = f * c + i * g
            h = o * jnp.tanh(c)
            outs[t] = h
        return jnp.stack(outs)                                   # (T, B, H)

    of = run(p["w_ih_f"], p["w_hh_f"], p["b_f"], reverse=False)
    ob = run(p["w_ih_b"], p["w_hh_b"], p["b_b"], reverse=True)
    x = jnp.concatenate([of, ob], axis=-1).reshape(T * B, 2 * H)
    x = jnp.maximum(jnp.dot(x, p["w1"], precision=hi) + p["b1"], 0.0)
    x = jnp.maximum(jnp.dot(x, p["w2"], precision=hi) + p["b2"], 0.0)
    return jnp.dot(x, p["w3"], precision=hi) + p["b3"]


if __name__ == "__main__":
    key = jax.random.PRNGKey(0)
    k_param, k_tok = jax.random.split(key)

    # B=8 fills all 8 sublanes of every per-step VPU/MXU op (perf review item).
    VOCAB, EMB, T, B = 20, 32, 8, 8
    params = init_params(k_param, vocab=VOCAB, emb_dim=EMB)
    fused = pack_params(params)

    token_ids = jax.random.randint(k_tok, (T, B), 0, VOCAB, dtype=jnp.int32)

    logits = jax.jit(interffe_lstm_forward)(token_ids, fused)
    logits = jax.block_until_ready(logits)

    assert logits.shape == (T * B, 2), logits.shape
    assert bool(jnp.all(jnp.isfinite(logits)))

    ref = _reference_forward(token_ids, params)
    max_err = float(jnp.max(jnp.abs(logits - ref)))
    assert max_err < 1e-3, f"mismatch vs reference: max abs err {max_err}"

    print("KERNEL_OK")
</pallas_src>

<mosaic_0001>
module attributes {stable_mosaic.version = 11 : i64} {
  func.func @_interffe_kernel(%arg0: memref<64x1xi32, #tpu.memory_space<vmem>>, %arg1: memref<20x32xf32, #tpu.memory_space<vmem>>, %arg2: memref<32x128xf32, #tpu.memory_space<vmem>>, %arg3: memref<32x128xf32, #tpu.memory_space<vmem>>, %arg4: memref<1x128xf32, #tpu.memory_space<vmem>>, %arg5: memref<32x128xf32, #tpu.memory_space<vmem>>, %arg6: memref<1x128xf32, #tpu.memory_space<vmem>>, %arg7: memref<128x30xf32, #tpu.memory_space<vmem>>, %arg8: memref<1x30xf32, #tpu.memory_space<vmem>>, %arg9: memref<30x128xf32, #tpu.memory_space<vmem>>, %arg10: memref<1x128xf32, #tpu.memory_space<vmem>>, %arg11: memref<64x128xf32, #tpu.memory_space<vmem>>) attributes {dimension_semantics = [], scalar_prefetch = 0 : i64, scratch_operands = 0 : i64, tpu.core_type = #tpu.core_type<tc>} {
    %c0 = arith.constant 0 : index
    %c0_0 = arith.constant 0 : index
    %0 = vector.load %arg0[%c0, %c0_0] : memref<64x1xi32, #tpu.memory_space<vmem>>, vector<64x1xi32>
    %1 = tpu.iota {dimensions = array<i32: 1>} : vector<64x20xi32>
    %2 = vector.broadcast %0 : vector<64x1xi32> to vector<64x20xi32>
    %3 = arith.cmpi eq, %2, %1 : vector<64x20xi32>
    %4 = arith.extui %3 : vector<64x20xi1> to vector<64x20xi32>
    %5 = arith.sitofp %4 : vector<64x20xi32> to vector<64x20xf32>
    %c0_1 = arith.constant 0 : index
    %c0_2 = arith.constant 0 : index
    %6 = vector.load %arg1[%c0_1, %c0_2] : memref<20x32xf32, #tpu.memory_space<vmem>>, vector<20x32xf32>
    %cst = arith.constant dense<0.000000e+00> : vector<64x32xf32>
    %7 = tpu.matmul %5, %6, %cst {dimension_numbers = #tpu.dot_dimension_numbers<[1], [0], [0], [1], [0, 0, 1, 1], [], []>} : vector<64x20xf32>, vector<20x32xf32>, vector<64x32xf32> -> vector<64x32xf32>
    %c0_3 = arith.constant 0 : index
    %c0_4 = arith.constant 0 : index
    %8 = vector.load %arg2[%c0_3, %c0_4] : memref<32x128xf32, #tpu.memory_space<vmem>>, vector<32x128xf32>
    %cst_5 = arith.constant dense<0.000000e+00> : vector<64x128xf32>
    %9 = tpu.matmul %7, %8, %cst_5 {dimension_numbers = #tpu.dot_dimension_numbers<[1], [0], [0], [1], [0, 0, 1, 1], [], []>} : vector<64x32xf32>, vector<32x128xf32>, vector<64x128xf32> -> vector<64x128xf32>
    %c0_6 = arith.constant 0 : index
    %c0_7 = arith.constant 0 : index
    %10 = vector.load %arg4[%c0_6, %c0_7] : memref<1x128xf32, #tpu.memory_space<vmem>>, vector<1x128xf32>
    %11 = vector.broadcast %10 : vector<1x128xf32> to vector<64x128xf32>
    %12 = arith.addf %9, %11 : vector<64x128xf32>
    %c0_8 = arith.constant 0 : index
    %c0_9 = arith.constant 0 : index
    %13 = vector.load %arg3[%c0_8, %c0_9] : memref<32x128xf32, #tpu.memory_space<vmem>>, vector<32x128xf32>
    %14 = tpu.iota {dimensions = array<i32: 1>} : vector<8x128xi32>
    %c32_i32 = arith.constant 32 : i32
    %c0_i32 = arith.constant 0 : i32
    %15 = arith.cmpi eq, %c32_i32, %c0_i32 : i32
    %c1_i32 = arith.constant 1 : i32
    %16 = arith.select %15, %c1_i32, %c32_i32 : i32
    %17 = vector.broadcast %16 : i32 to vector<8x128xi32>
    %18 = arith.remsi %14, %17 : vector<8x128xi32>
    %c0_i32_10 = arith.constant 0 : i32
    %19 = vector.broadcast %c0_i32_10 : i32 to vector<8x128xi32>
    %20 = arith.cmpi ne, %18, %19 : vector<8x128xi32>
    %c0_i32_11 = arith.constant 0 : i32
    %21 = vector.broadcast %c0_i32_11 : i32 to vector<8x128xi32>
    %22 = arith.cmpi slt, %18, %21 : vector<8x128xi32>
    %c0_i32_12 = arith.constant 0 : i32
    %23 = arith.cmpi slt, %16, %c0_i32_12 : i32
    %24 = vector.broadcast %23 : i1 to vector<8x128xi1>
    %25 = vector.broadcast %24 : vector<8x128xi1> to vector<8x128xi1>
    %26 = arith.xori %22, %25 : vector<8x128xi1>
    %27 = arith.andi %26, %20 : vector<8x128xi1>
    %28 = vector.broadcast %16 : i32 to vector<8x128xi32>
    %29 = arith.addi %18, %28 : vector<8x128xi32>
    %30 = arith.select %27, %29, %18 : vector<8x128xi1>, vector<8x128xi32>
    %c16_i32 = arith.constant 16 : i32
    %31 = vector.broadcast %c16_i32 : i32 to vector<8x128xi32>
    %32 = arith.cmpi slt, %30, %31 : vector<8x128xi32>
    %33 = tpu.iota {dimensions = array<i32: 1>} : vector<8x32xi32>
    %c16_i32_13 = arith.constant 16 : i32
    %34 = vector.broadcast %c16_i32_13 : i32 to vector<8x32xi32>
    %35 = arith.cmpi slt, %33, %34 : vector<8x32xi32>
    %cst_14 = arith.constant 0.000000e+00 : f32
    %36 = vector.broadcast %cst_14 : f32 to vector<8x32xf32>
    %cst_15 = arith.constant 0.000000e+00 : f32
    %37 = vector.broadcast %cst_15 : f32 to vector<8x32xf32>
    %38 = vector.extract_strided_slice %12 {offsets = [0, 0], sizes = [8, 128], strides = [1, 1]} : vector<64x128xf32> to vector<8x128xf32>
    %39 = vector.extract_strided_slice %12 {offsets = [56, 0], sizes = [8, 128], strides = [1, 1]} : vector<64x128xf32> to vector<8x128xf32>
    %40 = arith.select %32, %38, %39 : vector<8x128xi1>, vector<8x128xf32>
    %cst_16 = arith.constant dense<0.000000e+00> : vector<8x128xf32>
    %41 = tpu.matmul %36, %13, %cst_16 {dimension_numbers = #tpu.dot_dimension_numbers<[1], [0], [0], [1], [0, 0, 1, 1], [], []>} : vector<8x32xf32>, vector<32x128xf32>, vector<8x128xf32> -> vector<8x128xf32>
    %42 = arith.addf %40, %41 : vector<8x128xf32>
    %43 = arith.negf %42 : vector<8x128xf32>
    %44 = math.exp %43 : vector<8x128xf32>
    %cst_17 = arith.constant 1.000000e+00 : f32
    %45 = vector.broadcast %cst_17 : f32 to vector<8x128xf32>
    %46 = arith.addf %45, %44 : vector<8x128xf32>
    %47 = arith.divf %45, %46 : vector<8x128xf32>
    %48 = vector.extract_strided_slice %47 {offsets = [0, 0], sizes = [8, 32], strides = [1, 1]} : vector<8x128xf32> to vector<8x32xf32>
    %49 = vector.extract_strided_slice %47 {offsets = [0, 32], sizes = [8, 32], strides = [1, 1]} : vector<8x128xf32> to vector<8x32xf32>
    %50 = vector.extract_strided_slice %47 {offsets = [0, 64], sizes = [8, 32], strides = [1, 1]} : vector<8x128xf32> to vector<8x32xf32>
    %51 = vector.extract_strided_slice %42 {offsets = [0, 96], sizes = [8, 32], strides = [1, 1]} : vector<8x128xf32> to vector<8x32xf32>
    %52 = math.tanh %51 : vector<8x32xf32>
    %53 = arith.mulf %49, %37 : vector<8x32xf32>
    %54 = arith.mulf %48, %52 : vector<8x32xf32>
    %55 = arith.addf %53, %54 : vector<8x32xf32>
    %56 = math.tanh %55 : vector<8x32xf32>
    %57 = arith.mulf %50, %56 : vector<8x32xf32>
    %58 = vector.extract_strided_slice %12 {offsets = [8, 0], sizes = [8, 128], strides = [1, 1]} : vector<64x128xf32> to vector<8x128xf32>
    %59 = vector.extract_strided_slice %12 {offsets = [48, 0], sizes = [8, 128], strides = [1, 1]} : vector<64x128xf32> to vector<8x128xf32>
    %60 = arith.select %32, %58, %59 : vector<8x128xi1>, vector<8x128xf32>
    %cst_18 = arith.constant dense<0.000000e+00> : vector<8x128xf32>
    %61 = tpu.matmul %57, %13, %cst_18 {dimension_numbers = #tpu.dot_dimension_numbers<[1], [0], [0], [1], [0, 0, 1, 1], [], []>} : vector<8x32xf32>, vector<32x128xf32>, vector<8x128xf32> -> vector<8x128xf32>
    %62 = arith.addf %60, %61 : vector<8x128xf32>
    %63 = arith.negf %62 : vector<8x128xf32>
    %64 = math.exp %63 : vector<8x128xf32>
    %cst_19 = arith.constant 1.000000e+00 : f32
    %65 = vector.broadcast %cst_19 : f32 to vector<8x128xf32>
    %66 = arith.addf %65, %64 : vector<8x128xf32>
    %67 = arith.divf %65, %66 : vector<8x128xf32>
    %68 = vector.extract_strided_slice %67 {offsets = [0, 0], sizes = [8, 32], strides = [1, 1]} : vector<8x128xf32> to vector<8x32xf32>
    %69 = vector.extract_strided_slice %67 {offsets = [0, 32], sizes = [8, 32], strides = [1, 1]} : vector<8x128xf32> to vector<8x32xf32>
    %70 = vector.extract_strided_slice %67 {offsets = [0, 64], sizes = [8, 32], strides = [1, 1]} : vector<8x128xf32> to vector<8x32xf32>
    %71 = vector.extract_strided_slice %62 {offsets = [0, 96], sizes = [8, 32], strides = [1, 1]} : vector<8x128xf32> to vector<8x32xf32>
    %72 = math.tanh %71 : vector<8x32xf32>
    %73 = arith.mulf %69, %55 : vector<8x32xf32>
    %74 = arith.mulf %68, %72 : vector<8x32xf32>
    %75 = arith.addf %73, %74 : vector<8x32xf32>
    %76 = math.tanh %75 : vector<8x32xf32>
    %77 = arith.mulf %70, %76 : vector<8x32xf32>
    %78 = vector.extract_strided_slice %12 {offsets = [16, 0], sizes = [8, 128], strides = [1, 1]} : vector<64x128xf32> to vector<8x128xf32>
    %79 = vector.extract_strided_slice %12 {offsets = [40, 0], sizes = [8, 128], strides = [1, 1]} : vector<64x128xf32> to vector<8x128xf32>
    %80 = arith.select %32, %78, %79 : vector<8x128xi1>, vector<8x128xf32>
    %cst_20 = arith.constant dense<0.000000e+00> : vector<8x128xf32>
    %81 = tpu.matmul %77, %13, %cst_20 {dimension_numbers = #tpu.dot_dimension_numbers<[1], [0], [0], [1], [0, 0, 1, 1], [], []>} : vector<8x32xf32>, vector<32x128xf32>, vector<8x128xf32> -> vector<8x128xf32>
    %82 = arith.addf %80, %81 : vector<8x128xf32>
    %83 = arith.negf %82 : vector<8x128xf32>
    %84 = math.exp %83 : vector<8x128xf32>
    %cst_21 = arith.constant 1.000000e+00 : f32
    %85 = vector.broadcast %cst_21 : f32 to vector<8x128xf32>
    %86 = arith.addf %85, %84 : vector<8x128xf32>
    %87 = arith.divf %85, %86 : vector<8x128xf32>
    %88 = vector.extract_strided_slice %87 {offsets = [0, 0], sizes = [8, 32], strides = [1, 1]} : vector<8x128xf32> to vector<8x32xf32>
    %89 = vector.extract_strided_slice %87 {offsets = [0, 32], sizes = [8, 32], strides = [1, 1]} : vector<8x128xf32> to vector<8x32xf32>
    %90 = vector.extract_strided_slice %87 {offsets = [0, 64], sizes = [8, 32], strides = [1, 1]} : vector<8x128xf32> to vector<8x32xf32>
    %91 = vector.extract_strided_slice %82 {offsets = [0, 96], sizes = [8, 32], strides = [1, 1]} : vector<8x128xf32> to vector<8x32xf32>
    %92 = math.tanh %91 : vector<8x32xf32>
    %93 = arith.mulf %89, %75 : vector<8x32xf32>
    %94 = arith.mulf %88, %92 : vector<8x32xf32>
    %95 = arith.addf %93, %94 : vector<8x32xf32>
    %96 = math.tanh %95 : vector<8x32xf32>
    %97 = arith.mulf %90, %96 : vector<8x32xf32>
    %98 = vector.extract_strided_slice %12 {offsets = [24, 0], sizes = [8, 128], strides = [1, 1]} : vector<64x128xf32> to vector<8x128xf32>
    %99 = vector.extract_strided_slice %12 {offsets = [32, 0], sizes = [8, 128], strides = [1, 1]} : vector<64x128xf32> to vector<8x128xf32>
    %100 = arith.select %32, %98, %99 : vector<8x128xi1>, vector<8x128xf32>
    %cst_22 = arith.constant dense<0.000000e+00> : vector<8x128xf32>
    %101 = tpu.matmul %97, %13, %cst_22 {dimension_numbers = #tpu.dot_dimension_numbers<[1], [0], [0], [1], [0, 0, 1, 1], [], []>} : vector<8x32xf32>, vector<32x128xf32>, vector<8x128xf32> -> vector<8x128xf32>
    %102 = arith.addf %100, %101 : vector<8x128xf32>
    %103 = arith.negf %102 : vector<8x128xf32>
    %104 = math.exp %103 : vector<8x128xf32>
    %cst_23 = arith.constant 1.000000e+00 : f32
    %105 = vector.broadcast %cst_23 : f32 to vector<8x128xf32>
    %106 = arith.addf %105, %104 : vector<8x128xf32>
    %107 = arith.divf %105, %106 : vector<8x128xf32>
    %108 = vector.extract_strided_slice %107 {offsets = [0, 0], sizes = [8, 32], strides = [1, 1]} : vector<8x128xf32> to vector<8x32xf32>
    %109 = vector.extract_strided_slice %107 {offsets = [0, 32], sizes = [8, 32], strides = [1, 1]} : vector<8x128xf32> to vector<8x32xf32>
    %110 = vector.extract_strided_slice %107 {offsets = [0, 64], sizes = [8, 32], strides = [1, 1]} : vector<8x128xf32> to vector<8x32xf32>
    %111 = vector.extract_strided_slice %102 {offsets = [0, 96], sizes = [8, 32], strides = [1, 1]} : vector<8x128xf32> to vector<8x32xf32>
    %112 = math.tanh %111 : vector<8x32xf32>
    %113 = arith.mulf %109, %95 : vector<8x32xf32>
    %114 = arith.mulf %108, %112 : vector<8x32xf32>
    %115 = arith.addf %113, %114 : vector<8x32xf32>
    %116 = math.tanh %115 : vector<8x32xf32>
    %117 = arith.mulf %110, %116 : vector<8x32xf32>
    %118 = vector.extract_strided_slice %12 {offsets = [32, 0], sizes = [8, 128], strides = [1, 1]} : vector<64x128xf32> to vector<8x128xf32>
    %119 = vector.extract_strided_slice %12 {offsets = [24, 0], sizes = [8, 128], strides = [1, 1]} : vector<64x128xf32> to vector<8x128xf32>
    %120 = arith.select %32, %118, %119 : vector<8x128xi1>, vector<8x128xf32>
    %cst_24 = arith.constant dense<0.000000e+00> : vector<8x128xf32>
    %121 = tpu.matmul %117, %13, %cst_24 {dimension_numbers = #tpu.dot_dimension_numbers<[1], [0], [0], [1], [0, 0, 1, 1], [], []>} : vector<8x32xf32>, vector<32x128xf32>, vector<8x128xf32> -> vector<8x128xf32>
    %122 = arith.addf %120, %121 : vector<8x128xf32>
    %123 = arith.negf %122 : vector<8x128xf32>
    %124 = math.exp %123 : vector<8x128xf32>
    %cst_25 = arith.constant 1.000000e+00 : f32
    %125 = vector.broadcast %cst_25 : f32 to vector<8x128xf32>
    %126 = arith.addf %125, %124 : vector<8x128xf32>
    %127 = arith.divf %125, %126 : vector<8x128xf32>
    %128 = vector.extract_strided_slice %127 {offsets = [0, 0], sizes = [8, 32], strides = [1, 1]} : vector<8x128xf32> to vector<8x32xf32>
    %129 = vector.extract_strided_slice %127 {offsets = [0, 32], sizes = [8, 32], strides = [1, 1]} : vector<8x128xf32> to vector<8x32xf32>
    %130 = vector.extract_strided_slice %127 {offsets = [0, 64], sizes = [8, 32], strides = [1, 1]} : vector<8x128xf32> to vector<8x32xf32>
    %131 = vector.extract_strided_slice %122 {offsets = [0, 96], sizes = [8, 32], strides = [1, 1]} : vector<8x128xf32> to vector<8x32xf32>
    %132 = math.tanh %131 : vector<8x32xf32>
    %133 = arith.mulf %129, %115 : vector<8x32xf32>
    %134 = arith.mulf %128, %132 : vector<8x32xf32>
    %135 = arith.addf %133, %134 : vector<8x32xf32>
    %136 = math.tanh %135 : vector<8x32xf32>
    %137 = arith.mulf %130, %136 : vector<8x32xf32>
    %138 = vector.extract_strided_slice %12 {offsets = [40, 0], sizes = [8, 128], strides = [1, 1]} : vector<64x128xf32> to vector<8x128xf32>
    %139 = vector.extract_strided_slice %12 {offsets = [16, 0], sizes = [8, 128], strides = [1, 1]} : vector<64x128xf32> to vector<8x128xf32>
    %140 = arith.select %32, %138, %139 : vector<8x128xi1>, vector<8x128xf32>
    %cst_26 = arith.constant dense<0.000000e+00> : vector<8x128xf32>
    %141 = tpu.matmul %137, %13, %cst_26 {dimension_numbers = #tpu.dot_dimension_numbers<[1], [0], [0], [1], [0, 0, 1, 1], [], []>} : vector<8x32xf32>, vector<32x128xf32>, vector<8x128xf32> -> vector<8x128xf32>
    %142 = arith.addf %140, %141 : vector<8x128xf32>
    %143 = arith.negf %142 : vector<8x128xf32>
    %144 = math.exp %143 : vector<8x128xf32>
    %cst_27 = arith.constant 1.000000e+00 : f32
    %145 = vector.broadcast %cst_27 : f32 to vector<8x128xf32>
    %146 = arith.addf %145, %144 : vector<8x128xf32>
    %147 = arith.divf %145, %146 : vector<8x128xf32>
    %148 = vector.extract_strided_slice %147 {offsets = [0, 0], sizes = [8, 32], strides = [1, 1]} : vector<8x128xf32> to vector<8x32xf32>
    %149 = vector.extract_strided_slice %147 {offsets = [0, 32], sizes = [8, 32], strides = [1, 1]} : vector<8x128xf32> to vector<8x32xf32>
    %150 = vector.extract_strided_slice %147 {offsets = [0, 64], sizes = [8, 32], strides = [1, 1]} : vector<8x128xf32> to vector<8x32xf32>
    %151 = vector.extract_strided_slice %142 {offsets = [0, 96], sizes = [8, 32], strides = [1, 1]} : vector<8x128xf32> to vector<8x32xf32>
    %152 = math.tanh %151 : vector<8x32xf32>
    %153 = arith.mulf %149, %135 : vector<8x32xf32>
    %154 = arith.mulf %148, %152 : vector<8x32xf32>
    %155 = arith.addf %153, %154 : vector<8x32xf32>
    %156 = math.tanh %155 : vector<8x32xf32>
    %157 = arith.mulf %150, %156 : vector<8x32xf32>
    %158 = vector.extract_strided_slice %12 {offsets = [48, 0], sizes = [8, 128], strides = [1, 1]} : vector<64x128xf32> to vector<8x128xf32>
    %159 = vector.extract_strided_slice %12 {offsets = [8, 0], sizes = [8, 128], strides = [1, 1]} : vector<64x128xf32> to vector<8x128xf32>
    %160 = arith.select %32, %158, %159 : vector<8x128xi1>, vector<8x128xf32>
    %cst_28 = arith.constant dense<0.000000e+00> : vector<8x128xf32>
    %161 = tpu.matmul %157, %13, %cst_28 {dimension_numbers = #tpu.dot_dimension_numbers<[1], [0], [0], [1], [0, 0, 1, 1], [], []>} : vector<8x32xf32>, vector<32x128xf32>, vector<8x128xf32> -> vector<8x128xf32>
    %162 = arith.addf %160, %161 : vector<8x128xf32>
    %163 = arith.negf %162 : vector<8x128xf32>
    %164 = math.exp %163 : vector<8x128xf32>
    %cst_29 = arith.constant 1.000000e+00 : f32
    %165 = vector.broadcast %cst_29 : f32 to vector<8x128xf32>
    %166 = arith.addf %165, %164 : vector<8x128xf32>
    %167 = arith.divf %165, %166 : vector<8x128xf32>
    %168 = vector.extract_strided_slice %167 {offsets = [0, 0], sizes = [8, 32], strides = [1, 1]} : vector<8x128xf32> to vector<8x32xf32>
    %169 = vector.extract_strided_slice %167 {offsets = [0, 32], sizes = [8, 32], strides = [1, 1]} : vector<8x128xf32> to vector<8x32xf32>
    %170 = vector.extract_strided_slice %167 {offsets = [0, 64], sizes = [8, 32], strides = [1, 1]} : vector<8x128xf32> to vector<8x32xf32>
    %171 = vector.extract_strided_slice %162 {offsets = [0, 96], sizes = [8, 32], strides = [1, 1]} : vector<8x128xf32> to vector<8x32xf32>
    %172 = math.tanh %171 : vector<8x32xf32>
    %173 = arith.mulf %169, %155 : vector<8x32xf32>
    %174 = arith.mulf %168, %172 : vector<8x32xf32>
    %175 = arith.addf %173, %174 : vector<8x32xf32>
    %176 = math.tanh %175 : vector<8x32xf32>
    %177 = arith.mulf %170, %176 : vector<8x32xf32>
    %178 = vector.extract_strided_slice %12 {offsets = [56, 0], sizes = [8, 128], strides = [1, 1]} : vector<64x128xf32> to vector<8x128xf32>
    %179 = vector.extract_strided_slice %12 {offsets = [0, 0], sizes = [8, 128], strides = [1, 1]} : vector<64x128xf32> to vector<8x128xf32>
    %180 = arith.select %32, %178, %179 : vector<8x128xi1>, vector<8x128xf32>
    %cst_30 = arith.constant dense<0.000000e+00> : vector<8x128xf32>
    %181 = tpu.matmul %177, %13, %cst_30 {dimension_numbers = #tpu.dot_dimension_numbers<[1], [0], [0], [1], [0, 0, 1, 1], [], []>} : vector<8x32xf32>, vector<32x128xf32>, vector<8x128xf32> -> vector<8x128xf32>
    %182 = arith.addf %180, %181 : vector<8x128xf32>
    %183 = arith.negf %182 : vector<8x128xf32>
    %184 = math.exp %183 : vector<8x128xf32>
    %cst_31 = arith.constant 1.000000e+00 : f32
    %185 = vector.broadcast %cst_31 : f32 to vector<8x128xf32>
    %186 = arith.addf %185, %184 : vector<8x128xf32>
    %187 = arith.divf %185, %186 : vector<8x128xf32>
    %188 = vector.extract_strided_slice %187 {offsets = [0, 0], sizes = [8, 32], strides = [1, 1]} : vector<8x128xf32> to vector<8x32xf32>
    %189 = vector.extract_strided_slice %187 {offsets = [0, 32], sizes = [8, 32], strides = [1, 1]} : vector<8x128xf32> to vector<8x32xf32>
    %190 = vector.extract_strided_slice %187 {offsets = [0, 64], sizes = [8, 32], strides = [1, 1]} : vector<8x128xf32> to vector<8x32xf32>
    %191 = vector.extract_strided_slice %182 {offsets = [0, 96], sizes = [8, 32], strides = [1, 1]} : vector<8x128xf32> to vector<8x32xf32>
    %192 = math.tanh %191 : vector<8x32xf32>
    %193 = arith.mulf %189, %175 : vector<8x32xf32>
    %194 = arith.mulf %188, %192 : vector<8x32xf32>
    %195 = arith.addf %193, %194 : vector<8x32xf32>
    %196 = math.tanh %195 : vector<8x32xf32>
    %197 = arith.mulf %190, %196 : vector<8x32xf32>
    %198 = arith.select %35, %57, %197 : vector<8x32xi1>, vector<8x32xf32>
    %199 = arith.select %35, %77, %177 : vector<8x32xi1>, vector<8x32xf32>
    %200 = arith.select %35, %97, %157 : vector<8x32xi1>, vector<8x32xf32>
    %201 = arith.select %35, %117, %137 : vector<8x32xi1>, vector<8x32xf32>
    %202 = arith.select %35, %137, %117 : vector<8x32xi1>, vector<8x32xf32>
    %203 = arith.select %35, %157, %97 : vector<8x32xi1>, vector<8x32xf32>
    %204 = arith.select %35, %177, %77 : vector<8x32xi1>, vector<8x32xf32>
    %205 = arith.select %35, %197, %57 : vector<8x32xi1>, vector<8x32xf32>
    %206 = tpu.concatenate %198, %199, %200, %201, %202, %203, %204, %205 in 0 : vector<8x32xf32>, vector<8x32xf32>, vector<8x32xf32>, vector<8x32xf32>, vector<8x32xf32>, vector<8x32xf32>, vector<8x32xf32>, vector<8x32xf32> -> vector<64x32xf32>
    %c0_32 = arith.constant 0 : index
    %c0_33 = arith.constant 0 : index
    %207 = vector.load %arg5[%c0_32, %c0_33] : memref<32x128xf32, #tpu.memory_space<vmem>>, vector<32x128xf32>
    %cst_34 = arith.constant dense<0.000000e+00> : vector<64x128xf32>
    %208 = tpu.matmul %206, %207, %cst_34 {dimension_numbers = #tpu.dot_dimension_numbers<[1], [0], [0], [1], [0, 0, 1, 1], [], []>} : vector<64x32xf32>, vector<32x128xf32>, vector<64x128xf32> -> vector<64x128xf32>
    %c0_35 = arith.constant 0 : index
    %c0_36 = arith.constant 0 : index
    %209 = vector.load %arg6[%c0_35, %c0_36] : memref<1x128xf32, #tpu.memory_space<vmem>>, vector<1x128xf32>
    %210 = vector.broadcast %209 : vector<1x128xf32> to vector<64x128xf32>
    %211 = arith.addf %208, %210 : vector<64x128xf32>
    %cst_37 = arith.constant 0.000000e+00 : f32
    %212 = vector.broadcast %cst_37 : f32 to vector<64x128xf32>
    %213 = arith.maximumf %211, %212 : vector<64x128xf32>
    %c0_38 = arith.constant 0 : index
    %c0_39 = arith.constant 0 : index
    %214 = vector.load %arg7[%c0_38, %c0_39] : memref<128x30xf32, #tpu.memory_space<vmem>>, vector<128x30xf32>
    %cst_40 = arith.constant dense<0.000000e+00> : vector<64x30xf32>
    %215 = tpu.matmul %213, %214, %cst_40 {dimension_numbers = #tpu.dot_dimension_numbers<[1], [0], [0], [1], [0, 0, 1, 1], [], []>} : vector<64x128xf32>, vector<128x30xf32>, vector<64x30xf32> -> vector<64x30xf32>
    %c0_41 = arith.constant 0 : index
    %c0_42 = arith.constant 0 : index
    %216 = vector.load %arg8[%c0_41, %c0_42] : memref<1x30xf32, #tpu.memory_space<vmem>>, vector<1x30xf32>
    %217 = vector.broadcast %216 : vector<1x30xf32> to vector<64x30xf32>
    %218 = arith.addf %215, %217 : vector<64x30xf32>
    %cst_43 = arith.constant 0.000000e+00 : f32
    %219 = vector.broadcast %cst_43 : f32 to vector<64x30xf32>
    %220 = arith.maximumf %218, %219 : vector<64x30xf32>
    %c0_44 = arith.constant 0 : index
    %c0_45 = arith.constant 0 : index
    %221 = vector.load %arg9[%c0_44, %c0_45] : memref<30x128xf32, #tpu.memory_space<vmem>>, vector<30x128xf32>
    %cst_46 = arith.constant dense<0.000000e+00> : vector<64x128xf32>
    %222 = tpu.matmul %220, %221, %cst_46 {dimension_numbers = #tpu.dot_dimension_numbers<[1], [0], [0], [1], [0, 0, 1, 1], [], []>} : vector<64x30xf32>, vector<30x128xf32>, vector<64x128xf32> -> vector<64x128xf32>
    %c0_47 = arith.constant 0 : index
    %c0_48 = arith.constant 0 : index
    %223 = vector.load %arg10[%c0_47, %c0_48] : memref<1x128xf32, #tpu.memory_space<vmem>>, vector<1x128xf32>
    %224 = vector.broadcast %223 : vector<1x128xf32> to vector<64x128xf32>
    %225 = arith.addf %222, %224 : vector<64x128xf32>
    %c0_49 = arith.constant 0 : index
    %c0_50 = arith.constant 0 : index
    %226 = vector.load %arg11[%c0_49, %c0_50] : memref<64x128xf32, #tpu.memory_space<vmem>>, vector<64x128xf32>
    tpu.vector_store %arg11[%c0_49, %c0_50], %225 {strides = array<i32>} : memref<64x128xf32, #tpu.memory_space<vmem>>, vector<64x128xf32>,
    return
  }
}

</mosaic_0001>

<bundles_post_ra>
// kernel: interffe_lstm_forward.1
= control target key start
LH: loop header
LB: loop body
LE: loop exit
PB: predicated region body
PF: predicated region fallthrough
CT: control target
= control target key end

     0   :  { %v1181_v0 = vmov 0   ;;  %vm124_vm0 = vcmask 1043456   ;;  %v46_v13 = vlaneseq  ;;  %vm99_vm2 = vcmask 162816   ;;  %s1184_s15 = smov 64   ;;  %s1666_s0 = inlined_call_operand.vmem [shape: s32[64,1], index: 0, kind: input, shape index: {}]   ;;  %s1667_s1 = inlined_call_operand.vmem [shape: f32[20,32], index: 1, kind: input, shape index: {}]   ;;  %s1668_s2 = inlined_call_operand.vmem [shape: f32[32,128], index: 2, kind: input, shape index: {}]   ;;  %s1669_s4 = inlined_call_operand.vmem [shape: f32[1,128], index: 4, kind: input, shape index: {}]   ;;  %s1670_s3 = inlined_call_operand.vmem [shape: f32[32,128], index: 3, kind: input, shape index: {}]   ;;  %s1671_s5 = inlined_call_operand.vmem [shape: f32[32,128], index: 5, kind: input, shape index: {}]   ;;  %s1672_s6 = inlined_call_operand.vmem [shape: f32[1,128], index: 6, kind: input, shape index: {}]   ;;  %s1673_s7 = inlined_call_operand.vmem [shape: f32[128,30], index: 7, kind: input, shape index: {}]   ;;  %s1674_s8 = inlined_call_operand.vmem [shape: f32[1,30], index: 8, kind: input, shape index: {}]   ;;  %s1675_s9 = inlined_call_operand.vmem [shape: f32[30,128], index: 9, kind: input, shape index: {}]   ;;  %s1676_s10 = inlined_call_operand.vmem [shape: f32[1,128], index: 10, kind: input, shape index: {}]   ;;  %s1677_s11 = inlined_call_operand.vmem [shape: f32[64,128], index: 11, kind: output, shape index: {}]  }
   0x1   :  { %1111 = vset.pattern.permute.xlu1 %v1181_v0  ;;  %1110 = vset.pattern.permute.xlu0 %v1181_v0  ;;  %v40_v1 = vld [vmem:[%s1666_s0 + $0x10] sm:$0xff]  ;;  %v38_v2 = vld [vmem:[%s1666_s0] sm:$0xff]  ;;  %v97_v5 = vld [vmem:[%s1667_s1 + $0x8] sm:$0xff]  ;;  %v1182_v16 = vmov 0.0   ;;  %vm177_vm10 = vcmask 261120  }
   0x2   :  { %55 = vperm.xlu1 %1111, %v40_v1   ;;  %49 = vperm.xlu0 %1110, %v38_v2   ;;  %v42_v3 = vld [vmem:[%s1666_s0 + $0x20] sm:$0xff]  ;;  %v98_v4 = vld [vmem:[%s1667_s1 + $0x10] sm:$0xf]  ;;  %v41_v6 = vld [vmem:[%s1666_s0 + $0x18] sm:$0xff]  ;;  %v1278_v14 = vand.u32 127, %v46_v13 }
   0x3   :  { %1112 = vset.pattern.permute.xlu2 %v1181_v0  ;;  %1038 = vmatpush.msk.msra.mxu0 %vm124_vm0, %v98_v4  ;;  %v39_v7 = vld [vmem:[%s1666_s0 + $0x8] sm:$0xff]  ;;  %v45_v9 = vld [vmem:[%s1666_s0 + $0x38] sm:$0xff]  ;;  %v44_v10 = vld [vmem:[%s1666_s0 + $0x30] sm:$0xff] }
   0x4   :  { %61 = vperm.xlu2 %1112, %v42_v3   ;;  %1087 = vmatpush.msk.msra.mxu1 %vm124_vm0, %v98_v4  ;;  %v43_v8 = vld [vmem:[%s1666_s0 + $0x28] sm:$0xff]  ;;  %v96_v11 = vld [vmem:[%s1667_s1] sm:$0xff]  ;;  %v172_v21 = vld [vmem:[%s1668_s2 + $0x18] sm:$0xff]  ;;  %v251_v55 = vand.u32 31, %v1278_v14 }
   0x5   :  { %142 = vmatpush.msra.mxu0 %v97_v5  ;;  %v171_v22 = vld [vmem:[%s1668_s2 + $0x10] sm:$0xff]  ;;  %v170_v23 = vld [vmem:[%s1668_s2 + $0x8] sm:$0xff]  ;;  %v169_v24 = vld [vmem:[%s1668_s2] sm:$0xff] }
   0x6   :  { %1088 = vmatpush.msra.mxu1 %v97_v5  ;;  %v1313_v37 = vld [vmem:[%s1670_s3 + $0x18] sm:$0xff]  ;;  %v1320_v39 = vld [vmem:[%s1670_s3 + $0x10] sm:$0xff]  ;;  %v1327_v40 = vld [vmem:[%s1670_s3 + $0x8] sm:$0xff]  ;;  %vm1366_vm11 = vcmp.lt.s32.totalorder %v251_v55, 16 }
   0x7   :  { %143 = vmatpush.msra.mxu0 %v96_v11  ;;  %277 = vmatpush.msra.mxu2 %v1313_v37  ;;  %v1332_v41 = vld [vmem:[%s1670_s3] sm:$0xff] }
   0x8   :  { %1089 = vmatpush.msra.mxu1 %v96_v11  ;;  %341 = vmatpush.msra.mxu3 %v1313_v37  ;;  %v1113_v48 = vld [vmem:[%s1669_s4] ss:$0 sm:$0xff]  ;;  %s1183_s4 = smov 32  }
   0x9   :  { %278 = vmatpush.msra.mxu2 %v1320_v39 }
   0xa   :  { %58 = vperm.xlu1 %1111, %v41_v6   ;;  %52 = vperm.xlu0 %1110, %v39_v7  }
   0xb   :  { %214 = vmatpush.msrb.mxu1 %v172_v21  ;;  %342 = vmatpush.msra.mxu3 %v1320_v39 }
   0xc   :  { %64 = vperm.xlu2 %1112, %v43_v8   ;;  %279 = vmatpush.msra.mxu2 %v1327_v40 }
   0xd   :  { %215 = vmatpush.msrb.mxu1 %v171_v22  ;;  %343 = vmatpush.msra.mxu3 %v1327_v40 }
   0xe   :  { %280 = vmatpush.msra.mxu2 %v1332_v41 }
   0xf   :  { %216 = vmatpush.msrb.mxu1 %v170_v23  ;;  %281 = vmatmul.f32.vlgmr.msra.gmra.mxu2 %v1182_v16 }
  0x10   :  { %344 = vmatpush.msra.mxu3 %v1332_v41  ;;  %405 = vmatpush.msrb.mxu2 %v1313_v37 }
  0x11   :  { %217 = vmatpush.msrb.mxu1 %v169_v24 }
  0x12   :  { %70 = vperm.xlu1 %1111, %v45_v9   ;;  %67 = vperm.xlu0 %1110, %v44_v10  }
  0x13   :  { %469 = vmatpush.msrb.mxu3 %v1313_v37  ;;  %406 = vmatpush.msrb.mxu2 %v1320_v39 }
  0x15   :  { %470 = vmatpush.msrb.mxu3 %v1320_v39  ;;  %407 = vmatpush.msrb.mxu2 %v1327_v40 }
  0x17   :  { %471 = vmatpush.msrb.mxu3 %v1327_v40  ;;  %408 = vmatpush.msrb.mxu2 %v1332_v41 }
  0x19   :  { %472 = vmatpush.msrb.mxu3 %v1332_v41  ;;  %533 = vmatpush.msra.mxu2 %v1313_v37 }
  0x1b   :  { %534 = vmatpush.msra.mxu2 %v1320_v39 }
  0x1d   :  { %535 = vmatpush.msra.mxu2 %v1327_v40 }
  0x1f   :  { %536 = vmatpush.msra.mxu2 %v1332_v41 }
  0x5e   :  { %v62_v12 = vpop.permute.xlu2 %61 }
  0x5f   :  { %vm76_vm9 = vcmp.eq.s32.totalorder %v62_v12, %v1278_v14 }
  0x60   :  { %v1034_v34 = vsel %vm76_vm9, 1.0, %v1182_v16 }
  0x66   :  { %v65_v15 = vpop.permute.xlu2 %64 }
  0x67   :  { %vm77_vm1 = vcmp.eq.s32.totalorder %v65_v15, %v1278_v14 }
  0x68   :  { %v1035_v17 = vsel %vm77_vm1, 1.0, %v1182_v16 }
  0x69   :  { %1044 = vmatmul.msk.f32.vlgmr.msra.gmra.mxu1 %vm99_vm2, %v1035_v17 }
  0x74   :  { %v56_v18 = vpop.permute.xlu1 %55  ;;  %v50_v19 = vpop.permute.xlu0 %49 }
  0x75   :  { %vm72_vm3 = vcmp.eq.s32.totalorder %v50_v19, %v1278_v14  ;;  %vm74_vm5 = vcmp.eq.s32.totalorder %v56_v18, %v1278_v14 }
  0x76   :  { %v1030_v20 = vsel %vm72_vm3, 1.0, %v1182_v16  ;;  %v1032_v28 = vsel %vm74_vm5, 1.0, %v1182_v16 }
  0x77   :  { %1039 = vmatmul.msk.f32.vlgmr.msra.gmra.mxu0 %vm99_vm2, %v1030_v20 }
  0x7c   :  { %v53_v25 = vpop.permute.xlu0 %52  ;;  %v59_v26 = vpop.permute.xlu1 %58 }
  0x7d   :  { %vm73_vm4 = vcmp.eq.s32.totalorder %v53_v25, %v1278_v14  ;;  %vm75_vm7 = vcmp.eq.s32.totalorder %v59_v26, %v1278_v14 }
  0x7e   :  { %v1031_v27 = vsel %vm73_vm4, 1.0, %v1182_v16  ;;  %v1033_v32 = vsel %vm75_vm7, 1.0, %v1182_v16 }
  0x7f   :  { %1040 = vmatmul.msk.f32.gmra.mxu0 %vm99_vm2, %v1031_v27 }
  0x84   :  { %v68_v29 = vpop.permute.xlu0 %67  ;;  %v71_v31 = vpop.permute.xlu1 %70 }
  0x85   :  { %vm78_vm6 = vcmp.eq.s32.totalorder %v68_v29, %v1278_v14  ;;  %vm79_vm8 = vcmp.eq.s32.totalorder %v71_v31, %v1278_v14 }
  0x86   :  { %v1036_v30 = vsel %vm78_vm6, 1.0, %v1182_v16  ;;  %v1037_v33 = vsel %vm79_vm8, 1.0, %v1182_v16 }
  0x87   :  { %1041 = vmatmul.msk.f32.gmra.mxu0 %vm99_vm2, %v1032_v28  ;;  %1045 = vmatmul.msk.f32.gmra.mxu1 %vm99_vm2, %v1036_v30 }
  0x8f   :  { %1042 = vmatmul.msk.f32.gmra.mxu0 %vm99_vm2, %v1033_v32  ;;  %1046 = vmatmul.msk.f32.gmra.mxu1 %vm99_vm2, %v1037_v33 }
  0x92   :  { %v282_v8 = vpop.f32.mrf.mxu2 }
  0x97   :  { %1043 = vmatmul.msk.f32.gmra.mxu0 %vm99_vm2, %v1034_v34 }
  0xe6   :  { %v160_v44 = vpop.f32.mrf.mxu1 }
  0xf4   :  { %v145_v35 = vpop.f32.mrf.mxu0 }
  0xf5   :  { %1047 = vmatmul.msk.f32.vlgmr.msrb.gmra.mxu1 %vm177_vm10, %v145_v35 }
  0xfc   :  { %v148_v36 = vpop.f32.mrf.mxu0 }
  0xfd   :  { %1048 = vmatmul.msk.f32.gmra.mxu1 %vm177_vm10, %v148_v36 }
 0x104   :  { %v151_v38 = vpop.f32.mrf.mxu0  ;;  %v163_v45 = vpop.f32.mrf.mxu1 }
 0x105   :  { %1049 = vmatmul.msk.f32.gmra.mxu1 %vm177_vm10, %v151_v38 }
 0x10c   :  { %v154_v42 = vpop.f32.mrf.mxu0  ;;  %v166_v46 = vpop.f32.mrf.mxu1 }
 0x10d   :  { %1050 = vmatmul.msk.f32.gmra.mxu1 %vm177_vm10, %v154_v42 }
 0x114   :  { %v157_v43 = vpop.f32.mrf.mxu0 }
 0x115   :  { %1051 = vmatmul.msk.f32.gmra.mxu1 %vm177_vm10, %v157_v43 }
 0x11d   :  { %1052 = vmatmul.msk.f32.gmra.mxu1 %vm177_vm10, %v160_v44 }
 0x125   :  { %1053 = vmatmul.msk.f32.gmra.mxu1 %vm177_vm10, %v163_v45 }
 0x12d   :  { %1054 = vmatmul.msk.f32.gmra.mxu1 %vm177_vm10, %v166_v46 }
 0x172   :  { %v219_v47 = vpop.f32.mrf.mxu1 }
 0x173   :  { %v1400_v6 = vadd.f32 %v1113_v48, %v219_v47 }
 0x17a   :  { %v222_v49 = vpop.f32.mrf.mxu1 }
 0x17b   :  { %v1359_v50 = vadd.f32 %v1113_v48, %v222_v49 }
 0x182   :  { %v225_v51 = vpop.f32.mrf.mxu1 }
 0x183   :  { %v1361_v52 = vadd.f32 %v1113_v48, %v225_v51 }
 0x18a   :  { %v228_v53 = vpop.f32.mrf.mxu1 }
 0x18b   :  { %v1363_v54 = vadd.f32 %v1113_v48, %v228_v53 }
 0x192   :  { %v231_v56 = vpop.f32.mrf.mxu1 }
 0x193   :  { %v1370_v58 = vadd.f32 %v1113_v48, %v231_v56 }
 0x195   :  { %v451_v59 = vsel %vm1366_vm11, %v1363_v54, %v1370_v58  ;;  %v515_v60 = vsel %vm1366_vm11, %v1370_v58, %v1363_v54 }
 0x19a   :  { %v234_v61 = vpop.f32.mrf.mxu1 }
 0x19b   :  { %v1380_v62 = vadd.f32 %v1113_v48, %v234_v61 }
 0x19d   :  { %v387_v63 = vsel %vm1366_vm11, %v1361_v52, %v1380_v62  ;;  %v579_v0 = vsel %vm1366_vm11, %v1380_v62, %v1361_v52 }
 0x1a2   :  { %v237_v1 = vpop.f32.mrf.mxu1 }
 0x1a3   :  { %v1390_v2 = vadd.f32 %v1113_v48, %v237_v1 }
 0x1a5   :  { %v323_v3 = vsel %vm1366_vm11, %v1359_v50, %v1390_v2  ;;  %v643_v4 = vsel %vm1366_vm11, %v1390_v2, %v1359_v50 }
 0x1aa   :  { %v240_v5 = vpop.f32.mrf.mxu1 }
 0x1ab   :  { %v1402_v7 = vadd.f32 %v1113_v48, %v240_v5 }
 0x1ad   :  { %v261_v9 = vsel %vm1366_vm11, %v1400_v6, %v1402_v7  ;;  %v707_v10 = vsel %vm1366_vm11, %v1402_v7, %v1400_v6 }
 0x1ae   :  { %v285_v11 = vadd.f32 %v282_v8, %v261_v9 }
 0x1b0   :  { %1117 = vtanh.f32 %v285_v11  ;;  %v1055_v13 = vmul.f32 -1.442695, %v285_v11 }
 0x1b2   :  { %1119 = vpow2.f32 %v1055_v13 }
 0x1b6   :  { %v1118_v12 = vpop.eup %1117 }
 0x1b7   :  { %308 = vrot.lane.b32.xlu2 %v1118_v12, %s1183_s4 }
 0x1b8   :  { %v1120_v15 = vpop.eup %1119 }
 0x1b9   :  { %v289_v16 = vadd.f32 1.0, %v1120_v15 }
 0x1bb   :  { %1121 = vrcp.f32 %v289_v16  ;;  %v301_v22 = vand.u32 2147483648, %v289_v16  ;;  %vm295_vm13 = vweird.f32 %v289_v16  ;;  %v299_v23 = vand.u32 2147483647, %v289_v16 }
 0x1bd   :  { %v302_v25 = vor.u32 1.1754944e-38, %v301_v22  ;;  %vm300_vm15 = vcmp.eq.f32.partialorder %v299_v23, 8.507059e+37 }
 0x1c1   :  { %v1122_v17 = vpop.eup %1121 }
 0x1c2   :  { %v291_v18 = vmul.f32 %v1122_v17, %v289_v16  ;;  %vm296_vm12 = vweird.f32 %v1122_v17 }
 0x1c3   :  { %vm297_vm14 = vmor %vm295_vm13, %vm296_vm12 }
 0x1c4   :  { %v292_v19 = vsub.f32 1.0, %v291_v18 }
 0x1c6   :  { %v293_v20 = vmul.f32 %v1122_v17, %v292_v19 }
 0x1c8   :  { %v294_v21 = vadd.f32 %v1122_v17, %v293_v20 }
 0x1ca   :  { %v298_v24 = vsel %vm297_vm14, %v1122_v17, %v294_v21 }
 0x1cb   :  { %v303_v27 = vsel %vm300_vm15, %v302_v25, %v298_v24 }
 0x1cc   :  { %v306_v29 = vmul.f32 0.0, %v303_v27 }
 0x211   :  { %v309_v26 = vpop.permute.xlu2 %308 }
 0x212   :  { %v311_v28 = vmul.f32 %v309_v26, %v303_v27 }
 0x214   :  { %313 = vrot.lane.b32.xlu0 %v311_v28, %s1183_s4 }
 0x286   :  { %v314_v30 = vpop.permute.xlu0 %313 }
 0x287   :  { %v316_v31 = vadd.f32 %v314_v30, %v306_v29 }
 0x289   :  { %1123 = vtanh.f32 %v316_v31 }
 0x28f   :  { %v1124_v32 = vpop.eup %1123 }
 0x290   :  { %319 = vrot.lane.b32.xlu1 %v1124_v32, %s1183_s4 }
 0x302   :  { %v320_v33 = vpop.permute.xlu1 %319 }
 0x303   :  { %v322_v34 = vmul.f32 %v320_v33, %v303_v27 }
 0x305   :  { %325 = vrot.lane.b32.xlu2 %v322_v34, %s1184_s15 }
 0x35f   :  { %v1416_v35 = vpop.permute.xlu2 %325 }
 0x360   :  { %1056 = vmatmul.msk.f32.vlgmr.msra.gmra.mxu3 %vm177_vm10, %v1416_v35 }
 0x361   :  { %597 = vmatpush.msra.mxu3 %v1313_v37 }
 0x363   :  { %598 = vmatpush.msra.mxu3 %v1320_v39 }
 0x365   :  { %599 = vmatpush.msra.mxu3 %v1327_v40 }
 0x367   :  { %600 = vmatpush.msra.mxu3 %v1332_v41 }
 0x3e3   :  { %v346_v36 = vpop.f32.mrf.mxu3 }
 0x3e4   :  { %v349_v38 = vadd.f32 %v346_v36, %v323_v3 }
 0x3e6   :  { %1125 = vtanh.f32 %v349_v38  ;;  %v1057_v43 = vmul.f32 -1.442695, %v349_v38 }
 0x3e8   :  { %1127 = vpow2.f32 %v1057_v43 }
 0x3ec   :  { %v1126_v42 = vpop.eup %1125 }
 0x3ed   :  { %372 = vrot.lane.b32.xlu0 %v1126_v42, %s1183_s4 }
 0x3ee   :  { %v1128_v44 = vpop.eup %1127 }
 0x3ef   :  { %v353_v45 = vadd.f32 1.0, %v1128_v44 }
 0x3f1   :  { %1129 = vrcp.f32 %v353_v45  ;;  %v365_v53 = vand.u32 2147483648, %v353_v45  ;;  %vm359_vm1 = vweird.f32 %v353_v45  ;;  %v363_v55 = vand.u32 2147483647, %v353_v45 }
 0x3f3   :  { %v366_v61 = vor.u32 1.1754944e-38, %v365_v53  ;;  %vm364_vm3 = vcmp.eq.f32.partialorder %v363_v55, 8.507059e+37 }
 0x3f7   :  { %v1130_v46 = vpop.eup %1129 }
 0x3f8   :  { %v355_v47 = vmul.f32 %v1130_v46, %v353_v45  ;;  %vm360_vm0 = vweird.f32 %v1130_v46 }
 0x3f9   :  { %vm361_vm2 = vmor %vm359_vm1, %vm360_vm0 }
 0x3fa   :  { %v356_v48 = vsub.f32 1.0, %v355_v47 }
 0x3fc   :  { %v357_v49 = vmul.f32 %v1130_v46, %v356_v48 }
 0x3fe   :  { %v358_v51 = vadd.f32 %v1130_v46, %v357_v49 }
 0x400   :  { %v362_v56 = vsel %vm361_vm2, %v1130_v46, %v358_v51 }
 0x401   :  { %v367_v3 = vsel %vm364_vm3, %v366_v61, %v362_v56 }
 0x402   :  { %v370_v8 = vmul.f32 %v367_v3, %v316_v31 }
 0x45f   :  { %v373_v1 = vpop.permute.xlu0 %372 }
 0x460   :  { %v375_v5 = vmul.f32 %v373_v1, %v367_v3 }
 0x462   :  { %377 = vrot.lane.b32.xlu1 %v375_v5, %s1183_s4 }
 0x4d4   :  { %v378_v9 = vpop.permute.xlu1 %377 }
 0x4d5   :  { %v380_v11 = vadd.f32 %v378_v9, %v370_v8 }
 0x4d7   :  { %1131 = vtanh.f32 %v380_v11 }
 0x4dd   :  { %v1132_v12 = vpop.eup %1131 }
 0x4de   :  { %383 = vrot.lane.b32.xlu2 %v1132_v12, %s1183_s4 }
 0x538   :  { %v384_v13 = vpop.permute.xlu2 %383 }
 0x539   :  { %v386_v15 = vmul.f32 %v384_v13, %v367_v3 }
 0x53b   :  { %389 = vrot.lane.b32.xlu0 %v386_v15, %s1184_s15 }
 0x5ad   :  { %v1428_v16 = vpop.permute.xlu0 %389 }
 0x5ae   :  { %1058 = vmatmul.msk.f32.vlgmr.msrb.gmra.mxu2 %vm177_vm10, %v1428_v16 }
 0x5af   :  { %661 = vmatpush.msrb.mxu2 %v1313_v37 }
 0x5b1   :  { %662 = vmatpush.msrb.mxu2 %v1320_v39 }
 0x5b3   :  { %663 = vmatpush.msrb.mxu2 %v1327_v40 }
 0x5b5   :  { %664 = vmatpush.msrb.mxu2 %v1332_v41 }
 0x631   :  { %v410_v17 = vpop.f32.mrf.mxu2 }
 0x632   :  { %v413_v18 = vadd.f32 %v410_v17, %v387_v63 }
 0x634   :  { %1133 = vtanh.f32 %v413_v18  ;;  %v1059_v20 = vmul.f32 -1.442695, %v413_v18 }
 0x636   :  { %1135 = vpow2.f32 %v1059_v20 }
 0x63a   :  { %v1134_v19 = vpop.eup %1133 }
 0x63b   :  { %436 = vrot.lane.b32.xlu1 %v1134_v19, %s1183_s4 }
 0x63c   :  { %v1136_v21 = vpop.eup %1135 }
 0x63d   :  { %v417_v22 = vadd.f32 1.0, %v1136_v21 }
 0x63f   :  { %1137 = vrcp.f32 %v417_v22  ;;  %v429_v28 = vand.u32 2147483648, %v417_v22  ;;  %vm423_vm5 = vweird.f32 %v417_v22  ;;  %v427_v29 = vand.u32 2147483647, %v417_v22 }
 0x641   :  { %v430_v30 = vor.u32 1.1754944e-38, %v429_v28  ;;  %vm428_vm7 = vcmp.eq.f32.partialorder %v427_v29, 8.507059e+37 }
 0x645   :  { %v1138_v23 = vpop.eup %1137 }
 0x646   :  { %v419_v24 = vmul.f32 %v1138_v23, %v417_v22  ;;  %vm424_vm4 = vweird.f32 %v1138_v23 }
 0x647   :  { %vm425_vm6 = vmor %vm423_vm5, %vm424_vm4 }
 0x648   :  { %v420_v25 = vsub.f32 1.0, %v419_v24 }
 0x64a   :  { %v421_v26 = vmul.f32 %v1138_v23, %v420_v25 }
 0x64c   :  { %v422_v27 = vadd.f32 %v1138_v23, %v421_v26 }
 0x64e   :  { %v426_v63 = vsel %vm425_vm6, %v1138_v23, %v422_v27 }
 0x64f   :  { %v431_v32 = vsel %vm428_vm7, %v430_v30, %v426_v63 }
 0x650   :  { %v434_v34 = vmul.f32 %v431_v32, %v380_v11 }
 0x6ad   :  { %v437_v31 = vpop.permute.xlu1 %436 }
 0x6ae   :  { %v439_v33 = vmul.f32 %v437_v31, %v431_v32 }
 0x6b0   :  { %441 = vrot.lane.b32.xlu2 %v439_v33, %s1183_s4 }
 0x70a   :  { %v442_v36 = vpop.permute.xlu2 %441 }
 0x70b   :  { %v444_v38 = vadd.f32 %v442_v36, %v434_v34 }
 0x70d   :  { %1139 = vtanh.f32 %v444_v38 }
 0x713   :  { %v1140_v42 = vpop.eup %1139 }
 0x714   :  { %447 = vrot.lane.b32.xlu0 %v1140_v42, %s1183_s4 }
 0x786   :  { %v448_v43 = vpop.permute.xlu0 %447 }
 0x787   :  { %v450_v44 = vmul.f32 %v448_v43, %v431_v32 }
 0x789   :  { %453 = vrot.lane.b32.xlu1 %v450_v44, %s1184_s15 }
 0x7fb   :  { %v1445_v45 = vpop.permute.xlu1 %453 }
 0x7fc   :  { %1060 = vmatmul.msk.f32.vlgmr.msrb.gmra.mxu3 %vm177_vm10, %v1445_v45 }
 0x7fd   :  { %725 = vmatpush.msrb.mxu3 %v1313_v37 }
 0x7ff   :  { %726 = vmatpush.msrb.mxu3 %v1320_v39 }
 0x801   :  { %727 = vmatpush.msrb.mxu3 %v1327_v40 }
 0x803   :  { %728 = vmatpush.msrb.mxu3 %v1332_v41 }
 0x87f   :  { %v474_v46 = vpop.f32.mrf.mxu3 }
 0x880   :  { %v477_v47 = vadd.f32 %v474_v46, %v451_v59 }
 0x882   :  { %1141 = vtanh.f32 %v477_v47  ;;  %v1061_v49 = vmul.f32 -1.442695, %v477_v47 }
 0x884   :  { %1143 = vpow2.f32 %v1061_v49 }
 0x888   :  { %v1142_v48 = vpop.eup %1141 }
 0x889   :  { %500 = vrot.lane.b32.xlu2 %v1142_v48, %s1183_s4 }
 0x88a   :  { %v1144_v37 = vpop.eup %1143 }
 0x88b   :  { %v481_v51 = vadd.f32 1.0, %v1144_v37 }
 0x88d   :  { %1145 = vrcp.f32 %v481_v51  ;;  %v493_v56 = vand.u32 2147483648, %v481_v51  ;;  %vm487_vm9 = vweird.f32 %v481_v51  ;;  %v491_v61 = vand.u32 2147483647, %v481_v51 }
 0x88f   :  { %v494_v1 = vor.u32 1.1754944e-38, %v493_v56  ;;  %vm492_vm13 = vcmp.eq.f32.partialorder %v491_v61, 8.507059e+37 }
 0x893   :  { %v1146_v39 = vpop.eup %1145 }
 0x894   :  { %v483_v40 = vmul.f32 %v1146_v39, %v481_v51  ;;  %vm488_vm8 = vweird.f32 %v1146_v39 }
 0x895   :  { %vm489_vm12 = vmor %vm487_vm9, %vm488_vm8 }
 0x896   :  { %v484_v53 = vsub.f32 1.0, %v483_v40 }
 0x898   :  { %v485_v41 = vmul.f32 %v1146_v39, %v484_v53 }
 0x89a   :  { %v486_v55 = vadd.f32 %v1146_v39, %v485_v41 }
 0x89c   :  { %v490_v59 = vsel %vm489_vm12, %v1146_v39, %v486_v55 }
 0x89d   :  { %v495_v5 = vsel %vm492_vm13, %v494_v1, %v490_v59 }
 0x89e   :  { %v498_v9 = vmul.f32 %v495_v5, %v444_v38 }
 0x8e3   :  { %v501_v3 = vpop.permute.xlu2 %500 }
 0x8e4   :  { %v503_v8 = vmul.f32 %v501_v3, %v495_v5 }
 0x8e6   :  { %505 = vrot.lane.b32.xlu0 %v503_v8, %s1183_s4 }
 0x958   :  { %v506_v11 = vpop.permute.xlu0 %505 }
 0x959   :  { %v508_v12 = vadd.f32 %v506_v11, %v498_v9 }
 0x95b   :  { %1147 = vtanh.f32 %v508_v12 }
 0x961   :  { %v1148_v13 = vpop.eup %1147 }
 0x962   :  { %511 = vrot.lane.b32.xlu1 %v1148_v13, %s1183_s4 }
 0x9d4   :  { %v512_v15 = vpop.permute.xlu1 %511 }
 0x9d5   :  { %v514_v17 = vmul.f32 %v512_v15, %v495_v5 }
 0x9d7   :  { %517 = vrot.lane.b32.xlu2 %v514_v17, %s1184_s15 }
 0xa31   :  { %v1462_v18 = vpop.permute.xlu2 %517 }
 0xa32   :  { %1062 = vmatmul.msk.f32.vlgmr.msra.gmra.mxu2 %vm177_vm10, %v1462_v18 }
 0xab5   :  { %v538_v19 = vpop.f32.mrf.mxu2 }
 0xab6   :  { %v541_v20 = vadd.f32 %v538_v19, %v515_v60 }
 0xab8   :  { %1149 = vtanh.f32 %v541_v20  ;;  %v1063_v22 = vmul.f32 -1.442695, %v541_v20 }
 0xaba   :  { %1151 = vpow2.f32 %v1063_v22 }
 0xabe   :  { %v1150_v21 = vpop.eup %1149 }
 0xabf   :  { %564 = vrot.lane.b32.xlu0 %v1150_v21, %s1183_s4 }
 0xac0   :  { %v1152_v23 = vpop.eup %1151 }
 0xac1   :  { %v545_v24 = vadd.f32 1.0, %v1152_v23 }
 0xac3   :  { %1153 = vrcp.f32 %v545_v24  ;;  %v557_v63 = vand.u32 2147483648, %v545_v24  ;;  %vm551_vm15 = vweird.f32 %v545_v24  ;;  %v555_v30 = vand.u32 2147483647, %v545_v24 }
 0xac5   :  { %v558_v58 = vor.u32 1.1754944e-38, %v557_v63  ;;  %vm556_vm1 = vcmp.eq.f32.partialorder %v555_v30, 8.507059e+37 }
 0xac9   :  { %v1154_v25 = vpop.eup %1153 }
 0xaca   :  { %v547_v26 = vmul.f32 %v1154_v25, %v545_v24  ;;  %vm552_vm14 = vweird.f32 %v1154_v25 }
 0xacb   :  { %vm553_vm0 = vmor %vm551_vm15, %vm552_vm14  ;;  %vm260_vm15 = vcmp.lt.s32.totalorder %v1278_v14, 16 }
 0xacc   :  { %v548_v27 = vsub.f32 1.0, %v547_v26 }
 0xace   :  { %v549_v28 = vmul.f32 %v1154_v25, %v548_v27 }
 0xad0   :  { %v550_v29 = vadd.f32 %v1154_v25, %v549_v28 }
 0xad2   :  { %v554_v54 = vsel %vm553_vm0, %v1154_v25, %v550_v29  ;;  %vm948_vm0 = vcmask 244736  }
 0xad3   :  { %v559_v31 = vsel %vm556_vm1, %v558_v58, %v554_v54 }
 0xad4   :  { %v562_v33 = vmul.f32 %v559_v31, %v508_v12 }
 0xb31   :  { %v565_v60 = vpop.permute.xlu0 %564 }
 0xb32   :  { %v567_v32 = vmul.f32 %v565_v60, %v559_v31 }
 0xb34   :  { %569 = vrot.lane.b32.xlu1 %v567_v32, %s1183_s4 }
 0xba6   :  { %v570_v34 = vpop.permute.xlu1 %569 }
 0xba7   :  { %v572_v36 = vadd.f32 %v570_v34, %v562_v33 }
 0xba9   :  { %1155 = vtanh.f32 %v572_v36 }
 0xbaf   :  { %v1156_v38 = vpop.eup %1155 }
 0xbb0   :  { %575 = vrot.lane.b32.xlu2 %v1156_v38, %s1183_s4 }
 0xc0a   :  { %v576_v42 = vpop.permute.xlu2 %575 }
 0xc0b   :  { %v578_v43 = vmul.f32 %v576_v42, %v559_v31 }
 0xc0d   :  { %581 = vrot.lane.b32.xlu0 %v578_v43, %s1184_s15 }
 0xc7f   :  { %v1475_v44 = vpop.permute.xlu0 %581 }
 0xc80   :  { %1064 = vmatmul.msk.f32.vlgmr.msra.gmra.mxu3 %vm177_vm10, %v1475_v44 }
 0xd03   :  { %v602_v46 = vpop.f32.mrf.mxu3 }
 0xd04   :  { %v605_v47 = vadd.f32 %v602_v46, %v579_v0 }
 0xd06   :  { %1157 = vtanh.f32 %v605_v47  ;;  %v1065_v49 = vmul.f32 -1.442695, %v605_v47 }
 0xd08   :  { %1159 = vpow2.f32 %v1065_v49 }
 0xd0c   :  { %v1158_v48 = vpop.eup %1157 }
 0xd0d   :  { %628 = vrot.lane.b32.xlu1 %v1158_v48, %s1183_s4 }
 0xd0e   :  { %v1160_v37 = vpop.eup %1159 }
 0xd0f   :  { %v609_v51 = vadd.f32 1.0, %v1160_v37 }
 0xd11   :  { %1161 = vrcp.f32 %v609_v51  ;;  %v621_v56 = vand.u32 2147483648, %v609_v51  ;;  %vm615_vm3 = vweird.f32 %v609_v51  ;;  %v619_v61 = vand.u32 2147483647, %v609_v51 }
 0xd13   :  { %v622_v62 = vor.u32 1.1754944e-38, %v621_v56  ;;  %vm620_vm5 = vcmp.eq.f32.partialorder %v619_v61, 8.507059e+37 }
 0xd17   :  { %v1162_v39 = vpop.eup %1161 }
 0xd18   :  { %v611_v40 = vmul.f32 %v1162_v39, %v609_v51  ;;  %vm616_vm2 = vweird.f32 %v1162_v39 }
 0xd19   :  { %vm617_vm4 = vmor %vm615_vm3, %vm616_vm2 }
 0xd1a   :  { %v612_v53 = vsub.f32 1.0, %v611_v40 }
 0xd1c   :  { %v613_v41 = vmul.f32 %v1162_v39, %v612_v53 }
 0xd1e   :  { %v614_v55 = vadd.f32 %v1162_v39, %v613_v41 }
 0xd20   :  { %v618_v52 = vsel %vm617_vm4, %v1162_v39, %v614_v55 }
 0xd21   :  { %v623_v59 = vsel %vm620_vm5, %v622_v62, %v618_v52  ;;  %v793_v62 = vld [vmem:[%s1671_s5 + $0x18] sm:$0xff] }
 0xd22   :  { %v626_v3 = vmul.f32 %v623_v59, %v572_v36  ;;  %834 = vmatpush.msra.mxu2 %v793_v62 }
 0xd7f   :  { %v629_v0 = vpop.permute.xlu1 %628 }
 0xd80   :  { %v631_v1 = vmul.f32 %v629_v0, %v623_v59  ;;  %v792_v0 = vld [vmem:[%s1671_s5 + $0x10] sm:$0xff] }
 0xd81   :  { %835 = vmatpush.msra.mxu2 %v792_v0 }
 0xd82   :  { %633 = vrot.lane.b32.xlu2 %v631_v1, %s1183_s4  ;;  %v790_v1 = vld [vmem:[%s1671_s5] sm:$0xff] }
 0xddc   :  { %v634_v5 = vpop.permute.xlu2 %633 }
 0xddd   :  { %v636_v8 = vadd.f32 %v634_v5, %v626_v3 }
 0xddf   :  { %1163 = vtanh.f32 %v636_v8 }
 0xde5   :  { %v1164_v9 = vpop.eup %1163 }
 0xde6   :  { %639 = vrot.lane.b32.xlu0 %v1164_v9, %s1183_s4 }
 0xe58   :  { %v640_v11 = vpop.permute.xlu0 %639 }
 0xe59   :  { %v642_v12 = vmul.f32 %v640_v11, %v623_v59  ;;  %v791_v59 = vld [vmem:[%s1671_s5 + $0x8] sm:$0xff] }
 0xe5a   :  { %836 = vmatpush.msra.mxu2 %v791_v59 }
 0xe5b   :  { %645 = vrot.lane.b32.xlu1 %v642_v12, %s1184_s15 }
 0xe5c   :  { %837 = vmatpush.msra.mxu2 %v790_v1 }
 0xecd   :  { %v1488_v13 = vpop.permute.xlu1 %645 }
 0xece   :  { %1066 = vmatmul.msk.f32.vlgmr.msrb.gmra.mxu2 %vm177_vm10, %v1488_v13  ;;  %v782_v12 = vsel %vm260_vm15, %v1445_v45, %v1488_v13 }
 0xf51   :  { %v666_v15 = vpop.f32.mrf.mxu2 }
 0xf52   :  { %v669_v17 = vadd.f32 %v666_v15, %v643_v4  ;;  %v785_v15 = vsel %vm260_vm15, %v1462_v18, %v1475_v44 }
 0xf54   :  { %1165 = vtanh.f32 %v669_v17  ;;  %v1067_v20 = vmul.f32 -1.442695, %v669_v17  ;;  %v886_v17 = vld [vmem:[%s1673_s7 + $0x78] sm:$0xff] }
 0xf55   :  { %891 = vmatpush.msra.mxu1 %v886_v17  ;;  %1090 = vmatpush.msra.mxu3 %v886_v17 }
 0xf56   :  { %1167 = vpow2.f32 %v1067_v20  ;;  %v884_v20 = vld [vmem:[%s1673_s7 + $0x68] sm:$0xff] }
 0xf5a   :  { %v1166_v19 = vpop.eup %1165 }
 0xf5b   :  { %692 = vrot.lane.b32.xlu2 %v1166_v19, %s1183_s4  ;;  %v885_v19 = vld [vmem:[%s1673_s7 + $0x70] sm:$0xff] }
 0xf5c   :  { %v1168_v21 = vpop.eup %1167  ;;  %892 = vmatpush.msra.mxu1 %v885_v19  ;;  %1091 = vmatpush.msra.mxu3 %v885_v19 }
 0xf5d   :  { %v673_v22 = vadd.f32 1.0, %v1168_v21  ;;  %v883_v21 = vld [vmem:[%s1673_s7 + $0x60] sm:$0xff] }
 0xf5e   :  { %893 = vmatpush.msra.mxu1 %v884_v20  ;;  %1092 = vmatpush.msra.mxu3 %v884_v20 }
 0xf5f   :  { %1169 = vrcp.f32 %v673_v22  ;;  %v685_v28 = vand.u32 2147483648, %v673_v22  ;;  %vm679_vm7 = vweird.f32 %v673_v22  ;;  %v683_v29 = vand.u32 2147483647, %v673_v22 }
 0xf60   :  { %894 = vmatpush.msra.mxu1 %v883_v21  ;;  %1093 = vmatpush.msra.mxu3 %v883_v21 }
 0xf61   :  { %v686_v2 = vor.u32 1.1754944e-38, %v685_v28  ;;  %vm684_vm9 = vcmp.eq.f32.partialorder %v683_v29, 8.507059e+37  ;;  %v876_v28 = vld [vmem:[%s1673_s7 + $0x28] sm:$0xff] }
 0xf65   :  { %v1170_v23 = vpop.eup %1169 }
 0xf66   :  { %v675_v24 = vmul.f32 %v1170_v23, %v673_v22  ;;  %vm680_vm6 = vweird.f32 %v1170_v23  ;;  %v882_v22 = vld [vmem:[%s1673_s7 + $0x58] sm:$0xff] }
 0xf67   :  { %vm681_vm8 = vmor %vm679_vm7, %vm680_vm6  ;;  %895 = vmatpush.msra.mxu1 %v882_v22  ;;  %1094 = vmatpush.msra.mxu3 %v882_v22 }
 0xf68   :  { %v676_v25 = vsub.f32 1.0, %v675_v24  ;;  %v881_v24 = vld [vmem:[%s1673_s7 + $0x50] sm:$0xff] }
 0xf69   :  { %896 = vmatpush.msra.mxu1 %v881_v24  ;;  %1095 = vmatpush.msra.mxu3 %v881_v24 }
 0xf6a   :  { %v677_v26 = vmul.f32 %v1170_v23, %v676_v25  ;;  %v880_v25 = vld [vmem:[%s1673_s7 + $0x48] sm:$0xff] }
 0xf6b   :  { %897 = vmatpush.msra.mxu1 %v880_v25  ;;  %1096 = vmatpush.msra.mxu3 %v880_v25 }
 0xf6c   :  { %v678_v27 = vadd.f32 %v1170_v23, %v677_v26  ;;  %v787_v26 = vsel %vm260_vm15, %v1488_v13, %v1445_v45  ;;  %v875_v45 = vld [vmem:[%s1673_s7 + $0x20] sm:$0xff]  ;;  %v874_v13 = vld [vmem:[%s1673_s7 + $0x18] sm:$0xff] }
 0xf6e   :  { %v682_v50 = vsel %vm681_vm8, %v1170_v23, %v678_v27  ;;  %v786_v23 = vsel %vm260_vm15, %v1475_v44, %v1462_v18  ;;  %v879_v18 = vld [vmem:[%s1673_s7 + $0x40] sm:$0xff]  ;;  %v878_v44 = vld [vmem:[%s1673_s7 + $0x38] sm:$0xff]  ;;  %v877_v27 = vld [vmem:[%s1673_s7 + $0x30] sm:$0xff] }
 0xf6f   :  { %v687_v63 = vsel %vm684_vm9, %v686_v2, %v682_v50  ;;  %898 = vmatpush.msra.mxu1 %v879_v18  ;;  %1097 = vmatpush.msra.mxu3 %v879_v18  ;;  %v873_v50 = vld [vmem:[%s1673_s7 + $0x10] sm:$0xff] }
 0xf70   :  { %v690_v54 = vmul.f32 %v687_v63, %v636_v8 }
 0xf71   :  { %899 = vmatpush.msra.mxu1 %v878_v44  ;;  %1098 = vmatpush.msra.mxu3 %v878_v44 }
 0xf73   :  { %900 = vmatpush.msra.mxu1 %v877_v27  ;;  %1099 = vmatpush.msra.mxu3 %v877_v27 }
 0xf75   :  { %901 = vmatpush.msra.mxu1 %v876_v28  ;;  %1100 = vmatpush.msra.mxu3 %v876_v28 }
 0xf77   :  { %902 = vmatpush.msra.mxu1 %v875_v45  ;;  %1101 = vmatpush.msra.mxu3 %v875_v45 }
 0xf79   :  { %903 = vmatpush.msra.mxu1 %v874_v13  ;;  %1102 = vmatpush.msra.mxu3 %v874_v13 }
 0xf7b   :  { %904 = vmatpush.msra.mxu1 %v873_v50  ;;  %1103 = vmatpush.msra.mxu3 %v873_v50 }
 0xfb5   :  { %v693_v4 = vpop.permute.xlu2 %692 }
 0xfb6   :  { %v695_v30 = vmul.f32 %v693_v4, %v687_v63  ;;  %v871_v4 = vld [vmem:[%s1673_s7] sm:$0xff] }
 0xfb8   :  { %697 = vrot.lane.b32.xlu0 %v695_v30, %s1183_s4 }
0x102a   :  { %v698_v58 = vpop.permute.xlu0 %697 }
0x102b   :  { %v700_v60 = vadd.f32 %v698_v58, %v690_v54 }
0x102d   :  { %1171 = vtanh.f32 %v700_v60 }
0x1033   :  { %v1172_v31 = vpop.eup %1171 }
0x1034   :  { %703 = vrot.lane.b32.xlu1 %v1172_v31, %s1183_s4 }
0x10a6   :  { %v704_v32 = vpop.permute.xlu1 %703 }
0x10a7   :  { %v706_v33 = vmul.f32 %v704_v32, %v687_v63  ;;  %v1114_v63 = vld [vmem:[%s1672_s6] ss:$0 sm:$0xff] }
0x10a9   :  { %709 = vrot.lane.b32.xlu2 %v706_v33, %s1184_s15 }
0x1103   :  { %v1501_v34 = vpop.permute.xlu2 %709 }
0x1104   :  { %1068 = vmatmul.msk.f32.vlgmr.msrb.gmra.mxu3 %vm177_vm10, %v1501_v34  ;;  %v779_v11 = vsel %vm260_vm15, %v1428_v16, %v1501_v34  ;;  %v788_v29 = vsel %vm260_vm15, %v1501_v34, %v1428_v16  ;;  %v872_v16 = vld [vmem:[%s1673_s7 + $0x8] sm:$0xff] }
0x1105   :  { %905 = vmatpush.msra.mxu1 %v872_v16  ;;  %1104 = vmatpush.msra.mxu3 %v872_v16 }
0x1107   :  { %906 = vmatpush.msra.mxu1 %v871_v4  ;;  %1105 = vmatpush.msra.mxu3 %v871_v4 }
0x1187   :  { %v730_v36 = vpop.f32.mrf.mxu3 }
0x1188   :  { %v733_v38 = vadd.f32 %v730_v36, %v707_v10 }
0x118a   :  { %1173 = vtanh.f32 %v733_v38  ;;  %v1069_v43 = vmul.f32 -1.442695, %v733_v38 }
0x118c   :  { %1175 = vpow2.f32 %v1069_v43  ;;  %v942_v43 = vld [vmem:[%s1675_s9 + $0x10] sm:$0xff] }
0x1190   :  { %v1174_v42 = vpop.eup %1173 }
0x1191   :  { %756 = vrot.lane.b32.xlu0 %v1174_v42, %s1183_s4  ;;  %v943_v42 = vld [vmem:[%s1675_s9 + $0x18] sm:$0x3f] }
0x1192   :  { %v1176_v46 = vpop.eup %1175 }
0x1193   :  { %v737_v47 = vadd.f32 1.0, %v1176_v46  ;;  %v941_v46 = vld [vmem:[%s1675_s9 + $0x8] sm:$0xff] }
0x1195   :  { %1177 = vrcp.f32 %v737_v47  ;;  %v749_v57 = vand.u32 2147483648, %v737_v47  ;;  %vm743_vm13 = vweird.f32 %v737_v47  ;;  %v747_v40 = vand.u32 2147483647, %v737_v47 }
0x1197   :  { %v750_v7 = vor.u32 1.1754944e-38, %v749_v57  ;;  %vm748_vm14 = vcmp.eq.f32.partialorder %v747_v40, 8.507059e+37 }
0x119b   :  { %v1178_v48 = vpop.eup %1177 }
0x119c   :  { %v739_v49 = vmul.f32 %v1178_v48, %v737_v47  ;;  %vm744_vm12 = vweird.f32 %v1178_v48 }
0x119d   :  { %vm745_vm11 = vmor %vm743_vm13, %vm744_vm12 }
0x119e   :  { %v740_v37 = vsub.f32 1.0, %v739_v49 }
0x11a0   :  { %v741_v51 = vmul.f32 %v1178_v48, %v740_v37 }
0x11a2   :  { %v742_v39 = vadd.f32 %v1178_v48, %v741_v51 }
0x11a4   :  { %v746_v6 = vsel %vm745_vm11, %v1178_v48, %v742_v39 }
0x11a5   :  { %v751_v53 = vsel %vm748_vm14, %v750_v7, %v746_v6 }
0x11a6   :  { %v754_v55 = vmul.f32 %v751_v53, %v700_v60 }
0x1203   :  { %v757_v10 = vpop.permute.xlu0 %756 }
0x1204   :  { %v759_v41 = vmul.f32 %v757_v10, %v751_v53 }
0x1206   :  { %761 = vrot.lane.b32.xlu1 %v759_v41, %s1183_s4  ;;  %v940_v41 = vld [vmem:[%s1675_s9] sm:$0xff] }
0x1278   :  { %v762_v56 = vpop.permute.xlu1 %761 }
0x1279   :  { %v764_v61 = vadd.f32 %v762_v56, %v754_v55  ;;  %v1115_v55 = vld [vmem:[%s1674_s8] ss:$0 sm:$0xff] }
0x127b   :  { %1179 = vtanh.f32 %v764_v61 }
0x1281   :  { %v1180_v52 = vpop.eup %1179 }
0x1282   :  { %767 = vrot.lane.b32.xlu2 %v1180_v52, %s1183_s4 }
0x12dc   :  { %v768_v3 = vpop.permute.xlu2 %767 }
0x12dd   :  { %v770_v5 = vmul.f32 %v768_v3, %v751_v53 }
0x12df   :  { %773 = vrot.lane.b32.xlu0 %v770_v5, %s1184_s15 }
0x1351   :  { %v774_v8 = vpop.permute.xlu0 %773 }
0x1352   :  { %v776_v9 = vsel %vm260_vm15, %v1416_v35, %v774_v8  ;;  %v789_v2 = vsel %vm260_vm15, %v774_v8, %v1416_v35 }
0x1353   :  { %1070 = vmatmul.msk.f32.vlgmr.msra.gmra.mxu2 %vm177_vm10, %v776_v9 }
0x135b   :  { %1071 = vmatmul.msk.f32.gmra.mxu2 %vm177_vm10, %v779_v11 }
0x1363   :  { %1072 = vmatmul.msk.f32.gmra.mxu2 %vm177_vm10, %v782_v12 }
0x136b   :  { %1073 = vmatmul.msk.f32.gmra.mxu2 %vm177_vm10, %v785_v15 }
0x1373   :  { %1074 = vmatmul.msk.f32.gmra.mxu2 %vm177_vm10, %v786_v23 }
0x137b   :  { %1075 = vmatmul.msk.f32.gmra.mxu2 %vm177_vm10, %v787_v26  ;;  %v1116_v26 = vld [vmem:[%s1676_s10] ss:$0 sm:$0xff] }
0x1383   :  { %1076 = vmatmul.msk.f32.gmra.mxu2 %vm177_vm10, %v788_v29 }
0x138b   :  { %1077 = vmatmul.msk.f32.gmra.mxu2 %vm177_vm10, %v789_v2  ;;  %vm973_vm10 = vcmask 1045504  }
0x138c   :  { %1078 = vmatpush.msk.msrb.mxu0 %vm973_vm10, %v943_v42 }
0x138e   :  { %990 = vmatpush.msrb.mxu0 %v942_v43 }
0x1390   :  { %991 = vmatpush.msrb.mxu0 %v941_v46 }
0x1392   :  { %992 = vmatpush.msrb.mxu0 %v940_v41 }
0x13d6   :  { %v839_v14 = vpop.f32.mrf.mxu2 }
0x13d7   :  { %v840_v35 = vadd.f32 %v1114_v63, %v839_v14 }
0x13d9   :  { %v863_v30 = vmax.f32 %v840_v35, 0.0 }
0x13db   :  { %907 = vmatmul.f32.vlgmr.msra.gmra.mxu1 %v863_v30 }
0x13de   :  { %v842_v54 = vpop.f32.mrf.mxu2 }
0x13df   :  { %v843_v58 = vadd.f32 %v1114_v63, %v842_v54 }
0x13e1   :  { %v864_v60 = vmax.f32 %v843_v58, 0.0 }
0x13e3   :  { %910 = vmatmul.f32.gmra.mxu1 %v864_v60 }
0x13e6   :  { %v845_v31 = vpop.f32.mrf.mxu2 }
0x13e7   :  { %v846_v32 = vadd.f32 %v1114_v63, %v845_v31 }
0x13e9   :  { %v865_v33 = vmax.f32 %v846_v32, 0.0 }
0x13eb   :  { %913 = vmatmul.f32.vlgmr.msra.gmra.mxu3 %v865_v33 }
0x13ee   :  { %v848_v34 = vpop.f32.mrf.mxu2 }
0x13ef   :  { %v849_v36 = vadd.f32 %v1114_v63, %v848_v34 }
0x13f1   :  { %v866_v38 = vmax.f32 %v849_v36, 0.0 }
0x13f3   :  { %916 = vmatmul.f32.gmra.mxu3 %v866_v38 }
0x13f6   :  { %v851_v47 = vpop.f32.mrf.mxu2 }
0x13f7   :  { %v852_v48 = vadd.f32 %v1114_v63, %v851_v47 }
0x13f9   :  { %v867_v49 = vmax.f32 %v852_v48, 0.0 }
0x13fb   :  { %919 = vmatmul.f32.gmra.mxu3 %v867_v49 }
0x13fe   :  { %v854_v37 = vpop.f32.mrf.mxu2 }
0x13ff   :  { %v855_v51 = vadd.f32 %v1114_v63, %v854_v37 }
0x1401   :  { %v868_v39 = vmax.f32 %v855_v51, 0.0 }
0x1403   :  { %922 = vmatmul.f32.gmra.mxu3 %v868_v39 }
0x1406   :  { %v857_v57 = vpop.f32.mrf.mxu2 }
0x1407   :  { %v858_v40 = vadd.f32 %v1114_v63, %v857_v57 }
0x1409   :  { %v869_v6 = vmax.f32 %v858_v40, 0.0 }
0x140b   :  { %925 = vmatmul.f32.gmra.mxu3 %v869_v6 }
0x140e   :  { %v860_v7 = vpop.f32.mrf.mxu2 }
0x140f   :  { %v861_v10 = vadd.f32 %v1114_v63, %v860_v7 }
0x1411   :  { %v870_v53 = vmax.f32 %v861_v10, 0.0 }
0x1413   :  { %928 = vmatmul.f32.gmra.mxu3 %v870_v53 }
0x1458   :  { %v908_v56 = vpop.f32.mrf.mxu1 }
0x1459   :  { %v909_v61 = vadd.f32 %v1115_v55, %v908_v56 }
0x145b   :  { %v932_v52 = vmax.f32 %v909_v61, 0.0 }
0x145d   :  { %1079 = vmatmul.msk.f32.vlgmr.msrb.gmra.mxu0 %vm948_vm0, %v932_v52 }
0x1460   :  { %v911_v62 = vpop.f32.mrf.mxu1 }
0x1461   :  { %v912_v0 = vadd.f32 %v1115_v55, %v911_v62 }
0x1463   :  { %v933_v59 = vmax.f32 %v912_v0, 0.0 }
0x1465   :  { %1080 = vmatmul.msk.f32.gmra.mxu0 %vm948_vm0, %v933_v59 }
0x146e   :  { %v914_v1 = vpop.f32.mrf.mxu3 }
0x146f   :  { %v915_v3 = vadd.f32 %v1115_v55, %v914_v1 }
0x1471   :  { %v934_v5 = vmax.f32 %v915_v3, 0.0 }
0x1473   :  { %1081 = vmatmul.msk.f32.gmra.mxu0 %vm948_vm0, %v934_v5 }
0x1476   :  { %v917_v8 = vpop.f32.mrf.mxu3 }
0x1477   :  { %v918_v9 = vadd.f32 %v1115_v55, %v917_v8 }
0x1479   :  { %v935_v11 = vmax.f32 %v918_v9, 0.0 }
0x147b   :  { %1082 = vmatmul.msk.f32.gmra.mxu0 %vm948_vm0, %v935_v11 }
0x147e   :  { %v920_v12 = vpop.f32.mrf.mxu3 }
0x147f   :  { %v921_v15 = vadd.f32 %v1115_v55, %v920_v12 }
0x1481   :  { %v936_v17 = vmax.f32 %v921_v15, 0.0 }
0x1483   :  { %1083 = vmatmul.msk.f32.gmra.mxu0 %vm948_vm0, %v936_v17 }
0x1486   :  { %v923_v19 = vpop.f32.mrf.mxu3 }
0x1487   :  { %v924_v20 = vadd.f32 %v1115_v55, %v923_v19 }
0x1489   :  { %v937_v21 = vmax.f32 %v924_v20, 0.0 }
0x148b   :  { %1084 = vmatmul.msk.f32.gmra.mxu0 %vm948_vm0, %v937_v21 }
0x148e   :  { %v926_v22 = vpop.f32.mrf.mxu3 }
0x148f   :  { %v927_v23 = vadd.f32 %v1115_v55, %v926_v22 }
0x1491   :  { %v938_v24 = vmax.f32 %v927_v23, 0.0 }
0x1493   :  { %1085 = vmatmul.msk.f32.gmra.mxu0 %vm948_vm0, %v938_v24 }
0x1496   :  { %v929_v25 = vpop.f32.mrf.mxu3 }
0x1497   :  { %v930_v18 = vadd.f32 %v1115_v55, %v929_v25 }
0x1499   :  { %v939_v44 = vmax.f32 %v930_v18, 0.0 }
0x149b   :  { %1086 = vmatmul.msk.f32.gmra.mxu0 %vm948_vm0, %v939_v44 }
0x14da   :  { %v994_v27 = vpop.f32.mrf.mxu0 }
0x14db   :  { %v995_v28 = vadd.f32 %v1116_v26, %v994_v27 }
0x14dd   :  { %1018 = vst [vmem:[%s1677_s11] sm:$0xff] %v995_v28 }
0x14e2   :  { %v997_v45 = vpop.f32.mrf.mxu0 }
0x14e3   :  { %v998_v13 = vadd.f32 %v1116_v26, %v997_v45 }
0x14e5   :  { %1019 = vst [vmem:[%s1677_s11 + $0x8] sm:$0xff] %v998_v13 }
0x14f0   :  { %v1000_v29 = vpop.f32.mrf.mxu0 }
0x14f1   :  { %v1001_v50 = vadd.f32 %v1116_v26, %v1000_v29 }
0x14f3   :  { %1020 = vst [vmem:[%s1677_s11 + $0x10] sm:$0xff] %v1001_v50 }
0x14f8   :  { %v1003_v2 = vpop.f32.mrf.mxu0 }
0x14f9   :  { %v1004_v16 = vadd.f32 %v1116_v26, %v1003_v2 }
0x14fb   :  { %1021 = vst [vmem:[%s1677_s11 + $0x18] sm:$0xff] %v1004_v16 }
0x1500   :  { %v1006_v4 = vpop.f32.mrf.mxu0 }
0x1501   :  { %v1007_v63 = vadd.f32 %v1116_v26, %v1006_v4 }
0x1503   :  { %1022 = vst [vmem:[%s1677_s11 + $0x20] sm:$0xff] %v1007_v63 }
0x1508   :  { %v1009_v14 = vpop.f32.mrf.mxu0 }
0x1509   :  { %v1010_v35 = vadd.f32 %v1116_v26, %v1009_v14 }
0x150b   :  { %1023 = vst [vmem:[%s1677_s11 + $0x28] sm:$0xff] %v1010_v35 }
0x1510   :  { %v1012_v30 = vpop.f32.mrf.mxu0 }
0x1511   :  { %v1013_v54 = vadd.f32 %v1116_v26, %v1012_v30 }
0x1513   :  { %1024 = vst [vmem:[%s1677_s11 + $0x30] sm:$0xff] %v1013_v54 }
0x1518   :  { %v1015_v58 = vpop.f32.mrf.mxu0 }
0x1519   :  { %v1016_v60 = vadd.f32 %v1116_v26, %v1015_v58 }
0x151b   :  { %1025 = vst [vmem:[%s1677_s11 + $0x38] sm:$0xff] %v1016_v60 }

</bundles_post_ra>
